<compile_context>
chip_gen: v7x
topology: tpu7x:2x2x1
jax: 0.10.0
libtpu: 0.0.40
codegen_flags: <defaults>
</compile_context>

<pallas_src>
import functools
import numpy as np
import jax
import jax.numpy as jnp
from jax import lax
from jax.experimental import pallas as pl
from jax.experimental.pallas import tpu as pltpu

N_ROT = 30
N_ROT_PAD = 32     # pad to a full sublane group; pad rows are exact identity rotations
_OUT_W = 8         # lanes in the per-batch partial-sum output row


def _rotation_tables():
    """(32,1) cos / sin columns for the 30 y-axis symmetry rotations (+2 identity pads)."""
    theta = 2.0 * np.pi / N_ROT * np.arange(N_ROT, dtype=np.float64)
    cos = np.concatenate([np.cos(theta), np.ones(N_ROT_PAD - N_ROT)])
    sin = np.concatenate([np.sin(theta), np.zeros(N_ROT_PAD - N_ROT)])
    return (cos.reshape(N_ROT_PAD, 1).astype(np.float32),
            sin.reshape(N_ROT_PAD, 1).astype(np.float32))


def _make_fused_kernel(n_pts, nv, n_model, threshold, compute_sym):
    thr = float(threshold)
    inv_2thr = 1.0 / (2.0 * thr)
    half_thr = thr / 2.0

    def smooth_l1(diff):
        # elementwise smooth-L1-like penalty on |diff| (diff >= 0)
        lower = diff * diff * inv_2thr
        higher = diff - half_thr
        return jnp.where(diff > thr, higher, lower)

    def kernel(flags_ref,        # SMEM (bs, 4) int32: [is_sym, flip_x, flip_z, 0]
               assign_ref,       # (1, n_pts, nv)  f32
               prior_ref,        # (1, nv, 3)      f32
               deltas_ref,       # (1, nv, 3)      f32
               nocsT_ref,        # (1, 3, n_pts)   f32  (already masked)
               mask_ref,         # (1, 1, n_pts)   f32
               modelT_ref,       # (1, 3, n_model) f32
               cos_ref,          # (N_ROT_PAD, 1)  f32
               sin_ref,          # (N_ROT_PAD, 1)  f32
               out_ref):         # (1, 1, _OUT_W)  f32
        b = pl.program_id(0)

        # ---- softmax stats over nv (no soft / log_softmax matrix materialized) ----
        a = assign_ref[0]                                  # (n_pts, nv)
        m = jnp.max(a, axis=-1, keepdims=True)
        t = a - m
        e = jnp.exp(t)
        s = jnp.sum(e, axis=-1, keepdims=True)             # (n_pts, 1)
        inv_s = pl.reciprocal(s)                           # exact (feeds coords + entropy)
        # H_p = log(s_p) - (1/s_p) * sum_v e*t   (== -sum soft*log_softmax)
        ent = jnp.log(s) - inv_s * jnp.sum(e * t, axis=-1, keepdims=True)
        entropy_sum = jnp.sum(ent)

        # ---- instance shape & coords (normalize the skinny matmul result, not e) ----
        inst = prior_ref[0] + deltas_ref[0]                # (nv, 3)
        coords = jnp.dot(e, inst, preferred_element_type=jnp.float32) * inv_s  # (n_pts, 3)
        coords_T = coords.T                                # (3, n_pts) lane-dense
        # TODO(synk): emit coords_T directly from the MXU via
        #   lax.dot_general(inst, e, (((0,), (1,)), ((), ()))) once transposed-lhs
        #   dot_general lowering is confirmed on the target toolchain.

        # ---- deform loss: sum of per-vertex L2 norms of deltas ----
        d = deltas_ref[0]
        deform_sum = jnp.sum(jnp.sqrt(jnp.sum(d * d, axis=-1, keepdims=True)))

        # ---- correspondence loss: rotation bank stacked across sublanes ----
        mask_row = mask_ref[0]                             # (1, n_pts)
        cT = coords_T * mask_row                           # mask coords (nocs pre-masked)
        nT = nocsT_ref[0]                                  # (3, n_pts)
        cx, cy, cz = cT[0:1], cT[1:2], cT[2:3]
        nx, ny, nz = nT[0:1], nT[1:2], nT[2:3]

        loss_y = jnp.sum(smooth_l1(jnp.abs(ny - cy)))      # rotation-invariant y-term

        cos_col = cos_ref[...]                             # (32, 1)
        sin_col = sin_ref[...]                             # (32, 1)
        # rotated nocs (x,z) for all rotations at once: (32, n_pts) via broadcast
        rx = cos_col * nx - sin_col * nz
        rz = sin_col * nx + cos_col * nz
        pen = smooth_l1(jnp.abs(rx - cx)) + smooth_l1(jnp.abs(rz - cz))   # (32, n_pts)
        rot_losses = jnp.sum(pen, axis=-1, keepdims=True) + loss_y        # (32, 1)
        loss_id = jnp.sum(rot_losses[0:1, :])              # theta = 0 -> identity rotation
        min_loss = jnp.min(rot_losses)                     # pad rows duplicate identity
        is_sym = flags_ref[b, 0] == 1
        # NOTE: divides by n_pts (all points), matching torch.mean in the reference.
        corr_b = jnp.where(is_sym, min_loss, loss_id) * (1.0 / n_pts)

        # ---- chamfer(inst_shape, model): one pairwise matrix, two min reduces ----
        # TODO(synk): tile over lane blocks for production (>=1024-pt) shapes.
        yT = modelT_ref[0]                                 # (3, n_model)
        xx = jnp.sum(inst * inst, axis=-1, keepdims=True)  # (nv, 1)
        yy = jnp.sum(yT * yT, axis=0, keepdims=True)       # (1, n_model)
        p = xx + yy - 2.0 * jnp.dot(inst, yT, preferred_element_type=jnp.float32)
        cd_x_sum = jnp.sum(jnp.min(p, axis=1, keepdims=True))   # per inst vertex
        cd_y_sum = jnp.sum(jnp.min(p, axis=0, keepdims=True))   # per model point

        # ---- symmetry chamfer ----
        if compute_sym:
            sx = jnp.where(flags_ref[b, 1] == 1, -1.0, 1.0)
            sz = jnp.where(flags_ref[b, 2] == 1, -1.0, 1.0)
            col = lax.broadcasted_iota(jnp.int32, (nv, 3), 1)
            scale = jnp.where(col == 0, sx, jnp.where(col == 2, sz, 1.0))
            # g[i,j] = inst_i . (S inst_j); rhs-transposed matmul, no explicit inst.T
            g = lax.dot_general(inst * scale, inst, (((1,), (1,)), ((), ())),
                                preferred_element_type=jnp.float32)       # (nv, nv)
            # p_sym[i,j] = xx_i + xx_j - 2 g[i,j] is symmetric; the column-min form needs
            # xx only as a column and as a scalar sum (no lane-row relayout of xx).
            sym_half_sum = (jnp.sum(jnp.min(xx - 2.0 * g, axis=0, keepdims=True))
                            + jnp.sum(xx))
        else:
            sym_half_sum = 0.0

        # ---- emit per-batch partial sums as one 8-lane row ----
        lane = lax.broadcasted_iota(jnp.int32, (1, _OUT_W), 1)
        row = (jnp.where(lane == 0, corr_b, 0.0) +
               jnp.where(lane == 1, entropy_sum, 0.0) +
               jnp.where(lane == 2, cd_x_sum, 0.0) +
               jnp.where(lane == 3, cd_y_sum, 0.0) +
               jnp.where(lane == 4, deform_sum, 0.0) +
               jnp.where(lane == 5, sym_half_sum, 0.0))
        out_ref[0] = row

    return kernel


def _fused_losses(flags, assign_mat, prior, deltas, nocsT, maskf, modelT,
                  cos_tab, sin_tab, threshold, compute_sym):
    bs, n_pts, nv = assign_mat.shape
    n_model = modelT.shape[-1]
    kernel = _make_fused_kernel(n_pts, nv, n_model, threshold, compute_sym)
    grid_spec = pltpu.PrefetchScalarGridSpec(
        num_scalar_prefetch=1,
        grid=(bs,),
        in_specs=[
            pl.BlockSpec((1, n_pts, nv), lambda b, f: (b, 0, 0)),
            pl.BlockSpec((1, nv, 3), lambda b, f: (b, 0, 0)),
            pl.BlockSpec((1, nv, 3), lambda b, f: (b, 0, 0)),
            pl.BlockSpec((1, 3, n_pts), lambda b, f: (b, 0, 0)),
            pl.BlockSpec((1, 1, n_pts), lambda b, f: (b, 0, 0)),
            pl.BlockSpec((1, 3, n_model), lambda b, f: (b, 0, 0)),
            pl.BlockSpec((N_ROT_PAD, 1), lambda b, f: (0, 0)),
            pl.BlockSpec((N_ROT_PAD, 1), lambda b, f: (0, 0)),
        ],
        out_specs=pl.BlockSpec((1, 1, _OUT_W), lambda b, f: (b, 0, 0)),
    )
    return pl.pallas_call(
        kernel,
        out_shape=jax.ShapeDtypeStruct((bs, 1, _OUT_W), jnp.float32),
        grid_spec=grid_spec,
        compiler_params=pltpu.CompilerParams(
            dimension_semantics=("parallel",),
            # Raises v5e's 16 MiB default scoped VMEM; safe on v6e (128 MiB physical)
            # and within v7x's 64 MiB/TC.  Re-budget per generation for production shapes.
            vmem_limit_bytes=32 * 1024 * 1024,
        ),
    )(flags, assign_mat, prior, deltas, nocsT, maskf, modelT, cos_tab, sin_tab)


def shape_prior_loss_forward(assign_mat, deltas, prior, nocs, model, point_mask, sym, *,
                             corr_wt, cd_wt, entropy_wt, deform_wt, threshold, sym_wt):
    f32 = jnp.float32
    bs, n_pts, nv = assign_mat.shape
    n_model = model.shape[1]
    compute_sym = (sym_wt != 0)

    # scalar flags for SMEM prefetch: [is_sym, flip_x, flip_z, 0]
    sym = sym.astype(jnp.int32)
    is_sym = (sym[:, 0] == 1)
    flip_xz = is_sym & (jnp.sum(sym[:, 1:], axis=1) > 0)
    flip_z_only = (sym[:, 0] == 0) & (sym[:, 1] == 1)
    flags = jnp.stack([is_sym.astype(jnp.int32),
                       flip_xz.astype(jnp.int32),
                       (flip_xz | flip_z_only).astype(jnp.int32),
                       jnp.zeros((bs,), jnp.int32)], axis=1)          # (bs, 4)

    maskf = point_mask.astype(f32)[:, None, :]                        # (bs, 1, n_pts)
    nocs_m = jnp.where(point_mask[:, :, None], nocs.astype(f32), 0.0)
    nocsT = jnp.transpose(nocs_m, (0, 2, 1))                          # (bs, 3, n_pts)
    modelT = jnp.transpose(model.astype(f32), (0, 2, 1))              # (bs, 3, n_model)

    cos_np, sin_np = _rotation_tables()
    cos_tab = jnp.asarray(cos_np)
    sin_tab = jnp.asarray(sin_np)

    # TODO(synk): on v5e pass assign_mat as bf16 (upcast in-kernel) to halve HBM traffic.
    out = _fused_losses(flags, assign_mat.astype(f32), prior.astype(f32),
                        deltas.astype(f32), nocsT, maskf, modelT,
                        cos_tab, sin_tab, threshold, compute_sym)
    o = out[:, 0, :]                                                  # (bs, 8)

    corr_loss = corr_wt * jnp.sum(o[:, 0]) / bs
    entropy_loss = entropy_wt * jnp.sum(o[:, 1]) / (bs * n_pts)
    cd_loss = cd_wt * (jnp.sum(o[:, 2]) / (bs * nv) + jnp.sum(o[:, 3]) / (bs * n_model))
    deform_loss = deform_wt * jnp.sum(o[:, 4]) / (bs * nv)

    loss_dict = {
        'corr_loss': corr_loss,
        'entropy_loss': entropy_loss,
        'cd_loss': cd_loss,
        'deform_loss': deform_loss,
    }
    if compute_sym:
        # p_sym is symmetric -> mean(d1) == mean(d2); chamfer = 2 * mean(col-mins).
        sym_cd = 2.0 * jnp.sum(o[:, 5]) / (bs * nv)
        # mirrors the original: cal_sym_loss returns chamfer(...)/bs, then * sym_wt
        loss_dict['sym_loss'] = sym_wt * sym_cd / bs
    return loss_dict


if __name__ == "__main__":
    # Typical SPD loss weights.
    corr_wt, cd_wt, entropy_wt, deform_wt, threshold, sym_wt = \
        1.0, 5.0, 1e-4, 0.01, 0.1, 1.0

    bs, n_pts, nv, n_model = 2, 64, 128, 64
    key = jax.random.PRNGKey(0)
    k = jax.random.split(key, 7)
    assign_mat = jax.random.normal(k[0], (bs, n_pts, nv), jnp.float32)
    deltas = 0.05 * jax.random.normal(k[1], (bs, nv, 3), jnp.float32)
    prior = jax.random.uniform(k[2], (bs, nv, 3), jnp.float32, -0.5, 0.5)
    nocs = jax.random.uniform(k[3], (bs, n_pts, 3), jnp.float32, -0.5, 0.5)
    model = jax.random.uniform(k[4], (bs, n_model, 3), jnp.float32, -0.5, 0.5)
    point_mask = jax.random.bernoulli(k[5], 0.8, (bs, n_pts))
    sym = jnp.array([[1, 1, 0, 0],
                     [0, 1, 0, 0]], dtype=jnp.int32)

    fwd = functools.partial(
        shape_prior_loss_forward,
        corr_wt=corr_wt, cd_wt=cd_wt, entropy_wt=entropy_wt,
        deform_wt=deform_wt, threshold=threshold, sym_wt=sym_wt)

    losses = fwd(assign_mat, deltas, prior, nocs, model, point_mask, sym)
    losses = jax.block_until_ready(losses)
    for name, val in losses.items():
        assert jnp.isfinite(val), name
    print("KERNEL_OK")
</pallas_src>

<mosaic_0001>
module attributes {stable_mosaic.version = 11 : i64} {
  func.func @kernel(%arg0: i32, %arg1: memref<2x4xi32, #tpu.memory_space<smem>>, %arg2: memref<1x64x128xf32, #tpu.memory_space<vmem>>, %arg3: memref<1x128x3xf32, #tpu.memory_space<vmem>>, %arg4: memref<1x128x3xf32, #tpu.memory_space<vmem>>, %arg5: memref<1x3x64xf32, #tpu.memory_space<vmem>>, %arg6: memref<1x1x64xf32, #tpu.memory_space<vmem>>, %arg7: memref<1x3x64xf32, #tpu.memory_space<vmem>>, %arg8: memref<32x1xf32, #tpu.memory_space<vmem>>, %arg9: memref<32x1xf32, #tpu.memory_space<vmem>>, %arg10: memref<1x1x8xf32, #tpu.memory_space<vmem>>) attributes {dimension_semantics = [#tpu.dimension_semantics<parallel>], iteration_bounds = array<i64: 2>, scalar_prefetch = 1 : i64, scratch_operands = 0 : i64, tpu.core_type = #tpu.core_type<tc>, window_params = [{transform_indices = @transform_0, window_bounds = array<i64: 1, 64, 128>}, {transform_indices = @transform_1, window_bounds = array<i64: 1, 128, 3>}, {transform_indices = @transform_2, window_bounds = array<i64: 1, 128, 3>}, {transform_indices = @transform_3, window_bounds = array<i64: 1, 3, 64>}, {transform_indices = @transform_4, window_bounds = array<i64: 1, 1, 64>}, {transform_indices = @transform_5, window_bounds = array<i64: 1, 3, 64>}, {pipeline_mode = #tpu.pipeline_mode<synchronous>, transform_indices = @transform_6, window_bounds = array<i64: 32, 1>}, {pipeline_mode = #tpu.pipeline_mode<synchronous>, transform_indices = @transform_7, window_bounds = array<i64: 32, 1>}, {transform_indices = @transform_8, window_bounds = array<i64: 1, 1, 8>}]} {
    %c0 = arith.constant 0 : index
    %c0_0 = arith.constant 0 : index
    %c0_1 = arith.constant 0 : index
    %0 = vector.load %arg2[%c0, %c0_0, %c0_1] : memref<1x64x128xf32, #tpu.memory_space<vmem>>, vector<1x64x128xf32>
    %1 = vector.shape_cast %0 : vector<1x64x128xf32> to vector<64x128xf32>
    %cst = arith.constant dense<0xFF800000> : vector<64xf32>
    %2 = vector.multi_reduction <maximumf>, %1, %cst [1] : vector<64x128xf32> to vector<64xf32>
    %3 = vector.shape_cast %2 : vector<64xf32> to vector<64x1xf32>
    %4 = vector.broadcast %3 : vector<64x1xf32> to vector<64x128xf32>
    %5 = arith.subf %1, %4 : vector<64x128xf32>
    %6 = math.exp %5 : vector<64x128xf32>
    %cst_2 = arith.constant dense<0.000000e+00> : vector<64xf32>
    %7 = vector.multi_reduction <add>, %6, %cst_2 [1] : vector<64x128xf32> to vector<64xf32>
    %8 = vector.shape_cast %7 : vector<64xf32> to vector<64x1xf32>
    %9 = tpu.reciprocal %8 : vector<64x1xf32> -> vector<64x1xf32>
    %10 = math.log %8 : vector<64x1xf32>
    %11 = arith.mulf %6, %5 : vector<64x128xf32>
    %cst_3 = arith.constant dense<0.000000e+00> : vector<64xf32>
    %12 = vector.multi_reduction <add>, %11, %cst_3 [1] : vector<64x128xf32> to vector<64xf32>
    %13 = vector.shape_cast %12 : vector<64xf32> to vector<64x1xf32>
    %14 = arith.mulf %9, %13 : vector<64x1xf32>
    %15 = arith.subf %10, %14 : vector<64x1xf32>
    %16 = vector.shape_cast %15 : vector<64x1xf32> to vector<1x64x1xf32>
    %cst_4 = arith.constant dense<0.000000e+00> : vector<1xf32>
    %17 = vector.multi_reduction <add>, %16, %cst_4 [1, 2] : vector<1x64x1xf32> to vector<1xf32>
    %18 = vector.shape_cast %17 : vector<1xf32> to vector<1x1x1xf32>
    %19 = vector.extract %18[0, 0, 0] : f32 from vector<1x1x1xf32>
    %c0_5 = arith.constant 0 : index
    %c0_6 = arith.constant 0 : index
    %c0_7 = arith.constant 0 : index
    %20 = vector.load %arg3[%c0_5, %c0_6, %c0_7] : memref<1x128x3xf32, #tpu.memory_space<vmem>>, vector<1x128x3xf32>
    %21 = vector.shape_cast %20 : vector<1x128x3xf32> to vector<128x3xf32>
    %c0_8 = arith.constant 0 : index
    %c0_9 = arith.constant 0 : index
    %c0_10 = arith.constant 0 : index
    %22 = vector.load %arg4[%c0_8, %c0_9, %c0_10] : memref<1x128x3xf32, #tpu.memory_space<vmem>>, vector<1x128x3xf32>
    %23 = vector.shape_cast %22 : vector<1x128x3xf32> to vector<128x3xf32>
    %24 = arith.addf %21, %23 : vector<128x3xf32>
    %cst_11 = arith.constant dense<0.000000e+00> : vector<64x3xf32>
    %25 = tpu.matmul %6, %24, %cst_11 {dimension_numbers = #tpu.dot_dimension_numbers<[1], [0], [0], [1], [0, 0, 1, 1], [], []>} : vector<64x128xf32>, vector<128x3xf32>, vector<64x3xf32> -> vector<64x3xf32>
    %26 = vector.broadcast %9 : vector<64x1xf32> to vector<64x3xf32>
    %27 = arith.mulf %25, %26 : vector<64x3xf32>
    %28 = tpu.transpose %27, [1, 0] : vector<64x3xf32> -> vector<3x64xf32>
    %c0_12 = arith.constant 0 : index
    %c0_13 = arith.constant 0 : index
    %c0_14 = arith.constant 0 : index
    %29 = vector.load %arg4[%c0_12, %c0_13, %c0_14] : memref<1x128x3xf32, #tpu.memory_space<vmem>>, vector<1x128x3xf32>
    %30 = vector.shape_cast %29 : vector<1x128x3xf32> to vector<128x3xf32>
    %31 = arith.mulf %30, %30 : vector<128x3xf32>
    %cst_15 = arith.constant dense<0.000000e+00> : vector<128xf32>
    %32 = vector.multi_reduction <add>, %31, %cst_15 [1] : vector<128x3xf32> to vector<128xf32>
    %33 = vector.shape_cast %32 : vector<128xf32> to vector<128x1xf32>
    %34 = math.sqrt %33 : vector<128x1xf32>
    %35 = vector.shape_cast %34 : vector<128x1xf32> to vector<1x128x1xf32>
    %cst_16 = arith.constant dense<0.000000e+00> : vector<1xf32>
    %36 = vector.multi_reduction <add>, %35, %cst_16 [1, 2] : vector<1x128x1xf32> to vector<1xf32>
    %37 = vector.shape_cast %36 : vector<1xf32> to vector<1x1x1xf32>
    %38 = vector.extract %37[0, 0, 0] : f32 from vector<1x1x1xf32>
    %c0_17 = arith.constant 0 : index
    %c0_18 = arith.constant 0 : index
    %c0_19 = arith.constant 0 : index
    %39 = vector.load %arg6[%c0_17, %c0_18, %c0_19] : memref<1x1x64xf32, #tpu.memory_space<vmem>>, vector<1x1x64xf32>
    %40 = vector.shape_cast %39 : vector<1x1x64xf32> to vector<1x64xf32>
    %41 = vector.broadcast %40 : vector<1x64xf32> to vector<3x64xf32>
    %42 = arith.mulf %28, %41 : vector<3x64xf32>
    %c0_20 = arith.constant 0 : index
    %c0_21 = arith.constant 0 : index
    %c0_22 = arith.constant 0 : index
    %43 = vector.load %arg5[%c0_20, %c0_21, %c0_22] : memref<1x3x64xf32, #tpu.memory_space<vmem>>, vector<1x3x64xf32>
    %44 = vector.shape_cast %43 : vector<1x3x64xf32> to vector<3x64xf32>
    %45 = vector.extract_strided_slice %42 {offsets = [0, 0], sizes = [1, 64], strides = [1, 1]} : vector<3x64xf32> to vector<1x64xf32>
    %46 = vector.extract_strided_slice %42 {offsets = [1, 0], sizes = [1, 64], strides = [1, 1]} : vector<3x64xf32> to vector<1x64xf32>
    %47 = vector.extract_strided_slice %42 {offsets = [2, 0], sizes = [1, 64], strides = [1, 1]} : vector<3x64xf32> to vector<1x64xf32>
    %48 = vector.extract_strided_slice %44 {offsets = [0, 0], sizes = [1, 64], strides = [1, 1]} : vector<3x64xf32> to vector<1x64xf32>
    %49 = vector.extract_strided_slice %44 {offsets = [1, 0], sizes = [1, 64], strides = [1, 1]} : vector<3x64xf32> to vector<1x64xf32>
    %50 = vector.extract_strided_slice %44 {offsets = [2, 0], sizes = [1, 64], strides = [1, 1]} : vector<3x64xf32> to vector<1x64xf32>
    %51 = arith.subf %49, %46 : vector<1x64xf32>
    %52 = math.absf %51 : vector<1x64xf32>
    %53 = arith.mulf %52, %52 : vector<1x64xf32>
    %cst_23 = arith.constant 5.000000e+00 : f32
    %54 = vector.broadcast %cst_23 : f32 to vector<1x64xf32>
    %55 = arith.mulf %53, %54 : vector<1x64xf32>
    %cst_24 = arith.constant 5.000000e-02 : f32
    %56 = vector.broadcast %cst_24 : f32 to vector<1x64xf32>
    %57 = arith.subf %52, %56 : vector<1x64xf32>
    %cst_25 = arith.constant 1.000000e-01 : f32
    %58 = vector.broadcast %cst_25 : f32 to vector<1x64xf32>
    %59 = arith.cmpf ogt, %52, %58 : vector<1x64xf32>
    %60 = arith.select %59, %57, %55 : vector<1x64xi1>, vector<1x64xf32>
    %61 = vector.shape_cast %60 : vector<1x64xf32> to vector<1x1x64xf32>
    %cst_26 = arith.constant dense<0.000000e+00> : vector<1xf32>
    %62 = vector.multi_reduction <add>, %61, %cst_26 [1, 2] : vector<1x1x64xf32> to vector<1xf32>
    %63 = vector.shape_cast %62 : vector<1xf32> to vector<1x1x1xf32>
    %64 = vector.extract %63[0, 0, 0] : f32 from vector<1x1x1xf32>
    %c0_27 = arith.constant 0 : index
    %c0_28 = arith.constant 0 : index
    %65 = vector.load %arg8[%c0_27, %c0_28] : memref<32x1xf32, #tpu.memory_space<vmem>>, vector<32x1xf32>
    %c0_29 = arith.constant 0 : index
    %c0_30 = arith.constant 0 : index
    %66 = vector.load %arg9[%c0_29, %c0_30] : memref<32x1xf32, #tpu.memory_space<vmem>>, vector<32x1xf32>
    %67 = vector.broadcast %65 : vector<32x1xf32> to vector<32x64xf32>
    %68 = vector.broadcast %48 : vector<1x64xf32> to vector<32x64xf32>
    %69 = arith.mulf %67, %68 : vector<32x64xf32>
    %70 = vector.broadcast %66 : vector<32x1xf32> to vector<32x64xf32>
    %71 = vector.broadcast %50 : vector<1x64xf32> to vector<32x64xf32>
    %72 = arith.mulf %70, %71 : vector<32x64xf32>
    %73 = arith.subf %69, %72 : vector<32x64xf32>
    %74 = vector.broadcast %66 : vector<32x1xf32> to vector<32x64xf32>
    %75 = vector.broadcast %48 : vector<1x64xf32> to vector<32x64xf32>
    %76 = arith.mulf %74, %75 : vector<32x64xf32>
    %77 = vector.broadcast %65 : vector<32x1xf32> to vector<32x64xf32>
    %78 = vector.broadcast %50 : vector<1x64xf32> to vector<32x64xf32>
    %79 = arith.mulf %77, %78 : vector<32x64xf32>
    %80 = arith.addf %76, %79 : vector<32x64xf32>
    %81 = vector.broadcast %45 : vector<1x64xf32> to vector<32x64xf32>
    %82 = arith.subf %73, %81 : vector<32x64xf32>
    %83 = math.absf %82 : vector<32x64xf32>
    %84 = arith.mulf %83, %83 : vector<32x64xf32>
    %cst_31 = arith.constant 5.000000e+00 : f32
    %85 = vector.broadcast %cst_31 : f32 to vector<32x64xf32>
    %86 = arith.mulf %84, %85 : vector<32x64xf32>
    %cst_32 = arith.constant 5.000000e-02 : f32
    %87 = vector.broadcast %cst_32 : f32 to vector<32x64xf32>
    %88 = arith.subf %83, %87 : vector<32x64xf32>
    %cst_33 = arith.constant 1.000000e-01 : f32
    %89 = vector.broadcast %cst_33 : f32 to vector<32x64xf32>
    %90 = arith.cmpf ogt, %83, %89 : vector<32x64xf32>
    %91 = arith.select %90, %88, %86 : vector<32x64xi1>, vector<32x64xf32>
    %92 = vector.broadcast %47 : vector<1x64xf32> to vector<32x64xf32>
    %93 = arith.subf %80, %92 : vector<32x64xf32>
    %94 = math.absf %93 : vector<32x64xf32>
    %95 = arith.mulf %94, %94 : vector<32x64xf32>
    %cst_34 = arith.constant 5.000000e+00 : f32
    %96 = vector.broadcast %cst_34 : f32 to vector<32x64xf32>
    %97 = arith.mulf %95, %96 : vector<32x64xf32>
    %cst_35 = arith.constant 5.000000e-02 : f32
    %98 = vector.broadcast %cst_35 : f32 to vector<32x64xf32>
    %99 = arith.subf %94, %98 : vector<32x64xf32>
    %cst_36 = arith.constant 1.000000e-01 : f32
    %100 = vector.broadcast %cst_36 : f32 to vector<32x64xf32>
    %101 = arith.cmpf ogt, %94, %100 : vector<32x64xf32>
    %102 = arith.select %101, %99, %97 : vector<32x64xi1>, vector<32x64xf32>
    %103 = arith.addf %91, %102 : vector<32x64xf32>
    %cst_37 = arith.constant dense<0.000000e+00> : vector<32xf32>
    %104 = vector.multi_reduction <add>, %103, %cst_37 [1] : vector<32x64xf32> to vector<32xf32>
    %105 = vector.shape_cast %104 : vector<32xf32> to vector<32x1xf32>
    %106 = vector.broadcast %64 : f32 to vector<32x1xf32>
    %107 = arith.addf %105, %106 : vector<32x1xf32>
    %108 = vector.extract_strided_slice %107 {offsets = [0, 0], sizes = [1, 1], strides = [1, 1]} : vector<32x1xf32> to vector<1x1xf32>
    %109 = vector.shape_cast %108 : vector<1x1xf32> to vector<1x1x1xf32>
    %cst_38 = arith.constant dense<0.000000e+00> : vector<1xf32>
    %110 = vector.multi_reduction <add>, %109, %cst_38 [1, 2] : vector<1x1x1xf32> to vector<1xf32>
    %111 = vector.shape_cast %110 : vector<1xf32> to vector<1x1x1xf32>
    %112 = vector.extract %111[0, 0, 0] : f32 from vector<1x1x1xf32>
    %113 = vector.shape_cast %107 : vector<32x1xf32> to vector<1x32x1xf32>
    %cst_39 = arith.constant dense<0x7F800000> : vector<1xf32>
    %114 = vector.multi_reduction <minimumf>, %113, %cst_39 [1, 2] : vector<1x32x1xf32> to vector<1xf32>
    %115 = vector.shape_cast %114 : vector<1xf32> to vector<1x1x1xf32>
    %116 = vector.extract %115[0, 0, 0] : f32 from vector<1x1x1xf32>
    %117 = arith.index_cast %arg0 : i32 to index
    %c0_40 = arith.constant 0 : index
    %118 = memref.load %arg1[%117, %c0_40] : memref<2x4xi32, #tpu.memory_space<smem>>
    %c1_i32 = arith.constant 1 : i32
    %119 = arith.cmpi eq, %118, %c1_i32 : i32
    %120 = arith.select %119, %116, %112 : f32
    %cst_41 = arith.constant 1.562500e-02 : f32
    %121 = arith.mulf %120, %cst_41 : f32
    %c0_42 = arith.constant 0 : index
    %c0_43 = arith.constant 0 : index
    %c0_44 = arith.constant 0 : index
    %122 = vector.load %arg7[%c0_42, %c0_43, %c0_44] : memref<1x3x64xf32, #tpu.memory_space<vmem>>, vector<1x3x64xf32>
    %123 = vector.shape_cast %122 : vector<1x3x64xf32> to vector<3x64xf32>
    %124 = arith.mulf %24, %24 : vector<128x3xf32>
    %cst_45 = arith.constant dense<0.000000e+00> : vector<128xf32>
    %125 = vector.multi_reduction <add>, %124, %cst_45 [1] : vector<128x3xf32> to vector<128xf32>
    %126 = vector.shape_cast %125 : vector<128xf32> to vector<128x1xf32>
    %127 = arith.mulf %123, %123 : vector<3x64xf32>
    %cst_46 = arith.constant dense<0.000000e+00> : vector<64xf32>
    %128 = vector.multi_reduction <add>, %127, %cst_46 [0] : vector<3x64xf32> to vector<64xf32>
    %129 = vector.shape_cast %128 : vector<64xf32> to vector<1x64xf32>
    %130 = vector.broadcast %126 : vector<128x1xf32> to vector<128x64xf32>
    %131 = vector.broadcast %129 : vector<1x64xf32> to vector<128x64xf32>
    %132 = arith.addf %130, %131 : vector<128x64xf32>
    %cst_47 = arith.constant dense<0.000000e+00> : vector<128x64xf32>
    %133 = tpu.matmul %24, %123, %cst_47 {dimension_numbers = #tpu.dot_dimension_numbers<[1], [0], [0], [1], [0, 0, 1, 1], [], []>} : vector<128x3xf32>, vector<3x64xf32>, vector<128x64xf32> -> vector<128x64xf32>
    %cst_48 = arith.constant 2.000000e+00 : f32
    %134 = vector.broadcast %cst_48 : f32 to vector<128x64xf32>
    %135 = arith.mulf %134, %133 : vector<128x64xf32>
    %136 = arith.subf %132, %135 : vector<128x64xf32>
    %cst_49 = arith.constant dense<0x7F800000> : vector<128xf32>
    %137 = vector.multi_reduction <minimumf>, %136, %cst_49 [1] : vector<128x64xf32> to vector<128xf32>
    %138 = vector.shape_cast %137 : vector<128xf32> to vector<128x1xf32>
    %139 = vector.shape_cast %138 : vector<128x1xf32> to vector<1x128x1xf32>
    %cst_50 = arith.constant dense<0.000000e+00> : vector<1xf32>
    %140 = vector.multi_reduction <add>, %139, %cst_50 [1, 2] : vector<1x128x1xf32> to vector<1xf32>
    %141 = vector.shape_cast %140 : vector<1xf32> to vector<1x1x1xf32>
    %142 = vector.extract %141[0, 0, 0] : f32 from vector<1x1x1xf32>
    %cst_51 = arith.constant dense<0x7F800000> : vector<64xf32>
    %143 = vector.multi_reduction <minimumf>, %136, %cst_51 [0] : vector<128x64xf32> to vector<64xf32>
    %144 = vector.shape_cast %143 : vector<64xf32> to vector<1x64xf32>
    %145 = vector.shape_cast %144 : vector<1x64xf32> to vector<1x1x64xf32>
    %cst_52 = arith.constant dense<0.000000e+00> : vector<1xf32>
    %146 = vector.multi_reduction <add>, %145, %cst_52 [1, 2] : vector<1x1x64xf32> to vector<1xf32>
    %147 = vector.shape_cast %146 : vector<1xf32> to vector<1x1x1xf32>
    %148 = vector.extract %147[0, 0, 0] : f32 from vector<1x1x1xf32>
    %149 = arith.index_cast %arg0 : i32 to index
    %c1 = arith.constant 1 : index
    %150 = memref.load %arg1[%149, %c1] : memref<2x4xi32, #tpu.memory_space<smem>>
    %c1_i32_53 = arith.constant 1 : i32
    %151 = arith.cmpi eq, %150, %c1_i32_53 : i32
    %cst_54 = arith.constant -1.000000e+00 : f32
    %cst_55 = arith.constant 1.000000e+00 : f32
    %152 = arith.select %151, %cst_54, %cst_55 : f32
    %153 = arith.index_cast %arg0 : i32 to index
    %c2 = arith.constant 2 : index
    %154 = memref.load %arg1[%153, %c2] : memref<2x4xi32, #tpu.memory_space<smem>>
    %c1_i32_56 = arith.constant 1 : i32
    %155 = arith.cmpi eq, %154, %c1_i32_56 : i32
    %cst_57 = arith.constant -1.000000e+00 : f32
    %cst_58 = arith.constant 1.000000e+00 : f32
    %156 = arith.select %155, %cst_57, %cst_58 : f32
    %157 = tpu.iota {dimensions = array<i32: 1>} : vector<128x3xi32>
    %c0_i32 = arith.constant 0 : i32
    %158 = vector.broadcast %c0_i32 : i32 to vector<128x3xi32>
    %159 = arith.cmpi eq, %157, %158 : vector<128x3xi32>
    %c2_i32 = arith.constant 2 : i32
    %160 = vector.broadcast %c2_i32 : i32 to vector<128x3xi32>
    %161 = arith.cmpi eq, %157, %160 : vector<128x3xi32>
    %cst_59 = arith.constant 1.000000e+00 : f32
    %162 = vector.broadcast %156 : f32 to vector<128x3xf32>
    %163 = vector.broadcast %cst_59 : f32 to vector<128x3xf32>
    %164 = arith.select %161, %162, %163 : vector<128x3xi1>, vector<128x3xf32>
    %165 = vector.broadcast %152 : f32 to vector<128x3xf32>
    %166 = arith.select %159, %165, %164 : vector<128x3xi1>, vector<128x3xf32>
    %167 = arith.mulf %24, %166 : vector<128x3xf32>
    %cst_60 = arith.constant dense<0.000000e+00> : vector<128x128xf32>
    %168 = tpu.matmul %167, %24, %cst_60 {dimension_numbers = #tpu.dot_dimension_numbers<[1], [1], [0], [0], [0, 0, 1, 0], [], []>} : vector<128x3xf32>, vector<128x3xf32>, vector<128x128xf32> -> vector<128x128xf32>
    %cst_61 = arith.constant 2.000000e+00 : f32
    %169 = vector.broadcast %cst_61 : f32 to vector<128x128xf32>
    %170 = arith.mulf %169, %168 : vector<128x128xf32>
    %171 = vector.broadcast %126 : vector<128x1xf32> to vector<128x128xf32>
    %172 = arith.subf %171, %170 : vector<128x128xf32>
    %cst_62 = arith.constant dense<0x7F800000> : vector<128xf32>
    %173 = vector.multi_reduction <minimumf>, %172, %cst_62 [0] : vector<128x128xf32> to vector<128xf32>
    %174 = vector.shape_cast %173 : vector<128xf32> to vector<1x128xf32>
    %175 = vector.shape_cast %174 : vector<1x128xf32> to vector<1x1x128xf32>
    %cst_63 = arith.constant dense<0.000000e+00> : vector<1xf32>
    %176 = vector.multi_reduction <add>, %175, %cst_63 [1, 2] : vector<1x1x128xf32> to vector<1xf32>
    %177 = vector.shape_cast %176 : vector<1xf32> to vector<1x1x1xf32>
    %178 = vector.extract %177[0, 0, 0] : f32 from vector<1x1x1xf32>
    %179 = vector.shape_cast %126 : vector<128x1xf32> to vector<1x128x1xf32>
    %cst_64 = arith.constant dense<0.000000e+00> : vector<1xf32>
    %180 = vector.multi_reduction <add>, %179, %cst_64 [1, 2] : vector<1x128x1xf32> to vector<1xf32>
    %181 = vector.shape_cast %180 : vector<1xf32> to vector<1x1x1xf32>
    %182 = vector.extract %181[0, 0, 0] : f32 from vector<1x1x1xf32>
    %183 = arith.addf %178, %182 : f32
    %184 = tpu.iota {dimensions = array<i32: 1>} : vector<1x8xi32>
    %c0_i32_65 = arith.constant 0 : i32
    %185 = vector.broadcast %c0_i32_65 : i32 to vector<1x8xi32>
    %186 = arith.cmpi eq, %184, %185 : vector<1x8xi32>
    %cst_66 = arith.constant 0.000000e+00 : f32
    %187 = vector.broadcast %121 : f32 to vector<1x8xf32>
    %188 = vector.broadcast %cst_66 : f32 to vector<1x8xf32>
    %189 = arith.select %186, %187, %188 : vector<1x8xi1>, vector<1x8xf32>
    %c1_i32_67 = arith.constant 1 : i32
    %190 = vector.broadcast %c1_i32_67 : i32 to vector<1x8xi32>
    %191 = arith.cmpi eq, %184, %190 : vector<1x8xi32>
    %cst_68 = arith.constant 0.000000e+00 : f32
    %192 = vector.broadcast %19 : f32 to vector<1x8xf32>
    %193 = vector.broadcast %cst_68 : f32 to vector<1x8xf32>
    %194 = arith.select %191, %192, %193 : vector<1x8xi1>, vector<1x8xf32>
    %195 = arith.addf %189, %194 : vector<1x8xf32>
    %c2_i32_69 = arith.constant 2 : i32
    %196 = vector.broadcast %c2_i32_69 : i32 to vector<1x8xi32>
    %197 = arith.cmpi eq, %184, %196 : vector<1x8xi32>
    %cst_70 = arith.constant 0.000000e+00 : f32
    %198 = vector.broadcast %142 : f32 to vector<1x8xf32>
    %199 = vector.broadcast %cst_70 : f32 to vector<1x8xf32>
    %200 = arith.select %197, %198, %199 : vector<1x8xi1>, vector<1x8xf32>
    %201 = arith.addf %195, %200 : vector<1x8xf32>
    %c3_i32 = arith.constant 3 : i32
    %202 = vector.broadcast %c3_i32 : i32 to vector<1x8xi32>
    %203 = arith.cmpi eq, %184, %202 : vector<1x8xi32>
    %cst_71 = arith.constant 0.000000e+00 : f32
    %204 = vector.broadcast %148 : f32 to vector<1x8xf32>
    %205 = vector.broadcast %cst_71 : f32 to vector<1x8xf32>
    %206 = arith.select %203, %204, %205 : vector<1x8xi1>, vector<1x8xf32>
    %207 = arith.addf %201, %206 : vector<1x8xf32>
    %c4_i32 = arith.constant 4 : i32
    %208 = vector.broadcast %c4_i32 : i32 to vector<1x8xi32>
    %209 = arith.cmpi eq, %184, %208 : vector<1x8xi32>
    %cst_72 = arith.constant 0.000000e+00 : f32
    %210 = vector.broadcast %38 : f32 to vector<1x8xf32>
    %211 = vector.broadcast %cst_72 : f32 to vector<1x8xf32>
    %212 = arith.select %209, %210, %211 : vector<1x8xi1>, vector<1x8xf32>
    %213 = arith.addf %207, %212 : vector<1x8xf32>
    %c5_i32 = arith.constant 5 : i32
    %214 = vector.broadcast %c5_i32 : i32 to vector<1x8xi32>
    %215 = arith.cmpi eq, %184, %214 : vector<1x8xi32>
    %cst_73 = arith.constant 0.000000e+00 : f32
    %216 = vector.broadcast %183 : f32 to vector<1x8xf32>
    %217 = vector.broadcast %cst_73 : f32 to vector<1x8xf32>
    %218 = arith.select %215, %216, %217 : vector<1x8xi1>, vector<1x8xf32>
    %219 = arith.addf %213, %218 : vector<1x8xf32>
    %c0_74 = arith.constant 0 : index
    %c0_75 = arith.constant 0 : index
    %c0_76 = arith.constant 0 : index
    %220 = vector.load %arg10[%c0_74, %c0_75, %c0_76] : memref<1x1x8xf32, #tpu.memory_space<vmem>>, vector<1x1x8xf32>
    %221 = vector.shape_cast %220 : vector<1x1x8xf32> to vector<1x8xf32>
    %222 = vector.shape_cast %219 : vector<1x8xf32> to vector<1x1x8xf32>
    tpu.vector_store %arg10[%c0_74, %c0_75, %c0_76], %222 {strides = array<i32>} : memref<1x1x8xf32, #tpu.memory_space<vmem>>, vector<1x1x8xf32>,
    return
  }
  func.func @transform_0(%arg0: i32, %arg1: memref<2x4xi32, #tpu.memory_space<smem>>) -> (i32, i32, i32) {
    %c0_i32 = arith.constant 0 : i32
    %c0_i32_0 = arith.constant 0 : i32
    %c0_i32_1 = arith.constant 0 : i32
    return %arg0, %c0_i32, %c0_i32_0 : i32, i32, i32
  }
  func.func @transform_1(%arg0: i32, %arg1: memref<2x4xi32, #tpu.memory_space<smem>>) -> (i32, i32, i32) {
    %c0_i32 = arith.constant 0 : i32
    %c0_i32_0 = arith.constant 0 : i32
    %c0_i32_1 = arith.constant 0 : i32
    return %arg0, %c0_i32, %c0_i32_0 : i32, i32, i32
  }
  func.func @transform_2(%arg0: i32, %arg1: memref<2x4xi32, #tpu.memory_space<smem>>) -> (i32, i32, i32) {
    %c0_i32 = arith.constant 0 : i32
    %c0_i32_0 = arith.constant 0 : i32
    %c0_i32_1 = arith.constant 0 : i32
    return %arg0, %c0_i32, %c0_i32_0 : i32, i32, i32
  }
  func.func @transform_3(%arg0: i32, %arg1: memref<2x4xi32, #tpu.memory_space<smem>>) -> (i32, i32, i32) {
    %c0_i32 = arith.constant 0 : i32
    %c0_i32_0 = arith.constant 0 : i32
    %c0_i32_1 = arith.constant 0 : i32
    return %arg0, %c0_i32, %c0_i32_0 : i32, i32, i32
  }
  func.func @transform_4(%arg0: i32, %arg1: memref<2x4xi32, #tpu.memory_space<smem>>) -> (i32, i32, i32) {
    %c0_i32 = arith.constant 0 : i32
    %c0_i32_0 = arith.constant 0 : i32
    %c0_i32_1 = arith.constant 0 : i32
    return %arg0, %c0_i32, %c0_i32_0 : i32, i32, i32
  }
  func.func @transform_5(%arg0: i32, %arg1: memref<2x4xi32, #tpu.memory_space<smem>>) -> (i32, i32, i32) {
    %c0_i32 = arith.constant 0 : i32
    %c0_i32_0 = arith.constant 0 : i32
    %c0_i32_1 = arith.constant 0 : i32
    return %arg0, %c0_i32, %c0_i32_0 : i32, i32, i32
  }
  func.func @transform_6(%arg0: i32, %arg1: memref<2x4xi32, #tpu.memory_space<smem>>) -> (i32, i32) {
    %c0_i32 = arith.constant 0 : i32
    %c0_i32_0 = arith.constant 0 : i32
    %c0_i32_1 = arith.constant 0 : i32
    return %c0_i32, %c0_i32_0 : i32, i32
  }
  func.func @transform_7(%arg0: i32, %arg1: memref<2x4xi32, #tpu.memory_space<smem>>) -> (i32, i32) {
    %c0_i32 = arith.constant 0 : i32
    %c0_i32_0 = arith.constant 0 : i32
    %c0_i32_1 = arith.constant 0 : i32
    return %c0_i32, %c0_i32_0 : i32, i32
  }
  func.func @transform_8(%arg0: i32, %arg1: memref<2x4xi32, #tpu.memory_space<smem>>) -> (i32, i32, i32) {
    %c0_i32 = arith.constant 0 : i32
    %c0_i32_0 = arith.constant 0 : i32
    %c0_i32_1 = arith.constant 0 : i32
    return %arg0, %c0_i32, %c0_i32_0 : i32, i32, i32
  }
}

</mosaic_0001>

<bundles_post_ra>
// kernel: tpu_custom_call.1
= control target key start
LH: loop header
LB: loop body
LE: loop exit
PB: predicated region body
PF: predicated region fallthrough
CT: control target
= control target key end

     0   :  { %s3826_s0 = inlined_call_operand.vmem [shape: s32[2,4], index: 0, kind: input, shape index: {}]   ;;  %s3827_s1 = inlined_call_operand.vmem [shape: f32[2,64,128], index: 1, kind: input, shape index: {}]   ;;  %s3828_s2 = inlined_call_operand.vmem [shape: f32[2,128,3], index: 2, kind: input, shape index: {}]   ;;  %s3829_s3 = inlined_call_operand.vmem [shape: f32[2,128,3], index: 3, kind: input, shape index: {}]   ;;  %s3830_s4 = inlined_call_operand.vmem [shape: f32[2,3,64], index: 4, kind: input, shape index: {}]   ;;  %s3831_s5 = inlined_call_operand.vmem [shape: f32[2,1,64], index: 5, kind: input, shape index: {}]   ;;  %s3832_s6 = inlined_call_operand.vmem [shape: f32[2,3,64], index: 6, kind: input, shape index: {}]   ;;  %s3833_s7 = inlined_call_operand.vmem [shape: f32[32,1], index: 7, kind: input, shape index: {}]   ;;  %s3834_s8 = inlined_call_operand.vmem [shape: f32[32,1], index: 8, kind: input, shape index: {}]   ;;  %s3835_s9 = inlined_call_operand.hbm [shape: f32[2,1,8], index: 9, kind: output, shape index: {}]  }
   0x1   :  { %s14_s11 = sshll.u32 %s3826_s0, 4  ;;  %s15_s11 = int_to_ptr.vmem [resolvable:$true] %s14_s11 }
   0x2   :  { %s2590_s12 = scalar_lea.vmem %s15_s11, 32  ;;  %p2595_p1 = scmp.lt.s32.totalorder %s15_s11, %s15_s11 }
   0x3   :  { %p2591_p0 = scmp.ne.s32.totalorder %s15_s11, %s2590_s12  ;;  %p2596_p2 = scmp.lt.s32.totalorder %s2590_s12, %s2590_s12 }
   0x5   :  { %p2597_p3 = por %p2596_p2, %p2595_p1 }
   0x7   :  { %p2598_p4 = pnand %p2597_p3, %p2591_p0 }
   0x9   :  { %2601 = shalt.err (!%p2598_p4)  }
   0xa   :  { %s2668_s13 = smov [#allocation3]  }
   0xb   :  { %17 = dma.vmem_to_smem %s15_s11, 32, %s2668_s13, [#allocation2] }
   0xc   :  { %2646 = dma.done.wait [#allocation2], 32 }
   0xd   :  { %2647 = vsyncadd [#allocation2], 4294967264 }
   0xe   :  { %19 = sfence }
   0xf   :  { %20 = vsyncpa [#allocation5], 0 }
  0x10   :  { %22 = vsyncpa [#allocation5 + $0x1], 0  ;;  %s2724_s14 = smov 0   ;;  %s2726_s15 = smov 0  }
  0x11   :  { %s2728_s0 = smov 0   ;;  %s2730_s16 = smov 0  }
  0x12 LB: > { %3853 = sst [smem:[#allocation8_spill]] %s2662_s0  ;;  %s2745_s17 = sadd.s32 4294967295, %s2666_s16   ;;  %s2666_s16 = sphi %s2730_s16, %s3902_s16   ;;  %s2662_s0 = sphi %s2728_s0, %s3899_s0   ;;  %s2658_s15 = sphi %s2726_s15, %s3901_s15   ;;  %s2654_s14 = sphi %s2724_s14, %s3900_s14  }
  0x13   : > { %s2090_s18 = sadd.s32 4294967294, %s2666_s16   ;;  %s2749_s19 = sadd.s32 1, %s2666_s16  }
  0x14   : > { %s233_s20 = sadd.s32 1, %s2662_s0  ;;  %s230_s21 = ssub.s32 %s2666_s16, %s2749_s19 }
  0x15   : > { %p243_p5 = scmp.ne.s32.totalorder %s2662_s0, %s2658_s15  ;;  %p231_p6 = scmp.eq.s32.totalorder %s230_s21, 0 }
  0x16   : > { %p244_p7 = scmp.eq.s32.totalorder %s2745_s17, 1  ;;  %p249_p8 = scmp.ne.s32.totalorder %s2658_s15, %s2654_s14 }
  0x17   : > { %p250_p9 = scmp.eq.s32.totalorder %s2090_s18, 1  ;;  %p2093_p12 = scmp.ge.s32.totalorder %s2666_s16, 1 }
  0x18   : > { %s2760_s22 = scalar_select %p231_p6, %s2662_s0, %s233_s20  }
  0x19   : > { %p2762_p10 = por %p244_p7, %p243_p5  ;;  %p2766_p11 = por %p250_p9, %p249_p8 }
  0x1a   : > { %3854 = sst [smem:[#allocation9_spill]] %s2760_s22  ;;  %p318_p13 = scmp.lt.s32.totalorder %s2666_s16, 3 }
  0x1c   : > { %p319_p0 = pnand %p2093_p12, %p318_p13 }
  0x1e   : > { %322 = sbr.rel (%p319_p0) target bundleno = 885 (0x375), region = 52 }
  0x25   : > { %p372_p1 = scmp.lt.s32.totalorder %s2745_s17, 1  ;;  %s2774_s25 = sshll.u32 %s2745_s17, 7  ;;  %v3839_v0 = vmov 0   ;;  %vm760_vm0 = vcmask 23552   ;;  %v1019_v7 = vlaneseq  ;;  %vm1312_vm4 = vcmask 1042432  }
  0x26   : > { %s1612_s26 = sadd.s32 1, %s2774_s25  ;;  %s1616_s27 = sadd.s32 2, %s2774_s25  ;;  %2507 = vset.pattern.permute.xlu1 %v3839_v0  ;;  %vm2827_vm1 = vmpackc.low %vm760_vm0, %vm760_vm0  ;;  %vm526_vm5 = vcmask 7168  }
  0x27   : > { %s2780_s28 = scalar_select %p372_p1, %s2745_s17, 1  ;;  %v2854_v24 = vand.u32 127, %v1019_v7 }
  0x28   : > { %s2782_s29 = sld [smem:[#allocation3 + %s1612_s26]] }
  0x29   : > { %s2784_s30 = sld [smem:[#allocation3 + %s1616_s27]]  ;;  %s2165_s10 = sshll.u32 %s2780_s28, 6  ;;  %3859 = vst [vmem:[#allocation10_spill] sm:$0xff] %v2854_v24  ;;  %vm1623_vm2 = vcmp.eq.s32.totalorder %v2854_v24, 2  ;;  %vm1622_vm3 = vcmp.eq.s32.totalorder %v2854_v24, 0 }
  0x2a   : > { %s2166_s11 = sshll.u32 %s2780_s28, 7  ;;  %s2791_s18 = scalar_lea.vmem %s3827_s1, %s2165_s10 }
  0x2b   : > { %s2796_s22 = scalar_lea.vmem %s3828_s2, %s2166_s11  ;;  %s2801_s27 = scalar_lea.vmem %s3829_s3, %s2166_s11  ;;  %v2804_v1 = vld [vmem:[%s2791_s18 + $0x10] sm:$0xff]  ;;  %v2807_v2 = vld [vmem:[%s2791_s18] sm:$0xff]  ;;  %v2820_v10 = vld [vmem:[%s2791_s18 + $0x18] sm:$0xff] }
  0x2c   : > { %v551_v3 = vld [vmem:[%s2796_s22] sm:$0xff]  ;;  %410 = vmax.xlane.f32.xlu1 %v2804_v1  ;;  %406 = vmax.xlane.f32.xlu0 %v2807_v2  ;;  %v552_v4 = vld [vmem:[%s2796_s22 + $0x8] sm:$0xff]  ;;  %v553_v13 = vld [vmem:[%s2796_s22 + $0x10] sm:$0xff]  ;;  %s1170_s10 = sld [smem:[#allocation3 + %s2774_s25]]  ;;  %s370_s25 = sand.u32 1, %s2658_s15  }
  0x2d   : > { %v567_v5 = vld [vmem:[%s2801_s27] sm:$0xff]  ;;  %v568_v6 = vld [vmem:[%s2801_s27 + $0x8] sm:$0xff]  ;;  %v554_v14 = vld [vmem:[%s2796_s22 + $0x18] sm:$0xff] }
  0x2e   : > { %v2815_v8 = vadd.f32 %v567_v5, %v551_v3  ;;  %v2817_v9 = vadd.f32 %v568_v6, %v552_v4  ;;  %v2823_v11 = vld [vmem:[%s2791_s18 + $0x8] sm:$0xff]  ;;  %v569_v17 = vld [vmem:[%s2801_s27 + $0x10] sm:$0xff]  ;;  %v570_v18 = vld [vmem:[%s2801_s27 + $0x18] sm:$0xff]  ;;  %p1614_p3 = scmp.eq.s32.totalorder %s2782_s29, 1  ;;  %v745_v34 = vmul.f32 %v568_v6, %v568_v6  ;;  %v744_v35 = vmul.f32 %v567_v5, %v567_v5 }
  0x2f   : > { %p1618_p2 = scmp.eq.s32.totalorder %s2784_s30, 1  ;;  %v2837_v16 = vld [vmem:[%s2791_s18 + $0x28] sm:$0xff]  ;;  %v2844_v19 = vld [vmem:[%s2791_s18 + $0x20] sm:$0xff]  ;;  %v2846_v20 = vadd.f32 %v569_v17, %v553_v13  ;;  %v2848_v21 = vadd.f32 %v570_v18, %v554_v14  ;;  %v557_v27 = vld [vmem:[%s2796_s22 + $0x30] sm:$0xff]  ;;  %v747_v48 = vmul.f32 %v570_v18, %v570_v18  ;;  %v746_v51 = vmul.f32 %v569_v17, %v569_v17 }
  0x30   : > { %v2367_v15 = vpack.c.bf16 %v2817_v9, %v2815_v8  ;;  %412 = vmax.xlane.f32.xlu1 %v2820_v10  ;;  %408 = vmax.xlane.f32.xlu0 %v2823_v11  ;;  %v555_v22 = vld [vmem:[%s2796_s22 + $0x20] sm:$0xff]  ;;  %v556_v23 = vld [vmem:[%s2796_s22 + $0x28] sm:$0xff]  ;;  %v558_v31 = vld [vmem:[%s2796_s22 + $0x38] sm:$0xff]  ;;  %s2887_s30 = scalar_select %p1614_p3, -1.0, 1.0  ;;  %v764_v46 = vsel %vm760_vm0, %v745_v34, 0.0 }
  0x31   : > { %v2859_v25 = vld [vmem:[%s2801_s27 + $0x20] sm:$0xff]  ;;  %v572_v26 = vld [vmem:[%s2801_s27 + $0x28] sm:$0xff]  ;;  %s2865_s0 = scalar_select %p1618_p2, -1.0, 1.0  ;;  %v2371_v28 = vpack.c.bf16 %v2848_v21, %v2846_v20  ;;  %v2878_v32 = vld [vmem:[%s2801_s27 + $0x30] sm:$0xff]  ;;  %v761_v49 = vsel %vm760_vm0, %v744_v35, 0.0 }
  0x32   : > { %2401 = vmatprep.subr.msk.bf16.mxu1 %vm2827_vm1, %v2367_v15  ;;  %2368 = vmatprep.subr.bf16.mxu0 %v2367_v15  ;;  %v2872_v29 = vadd.f32 %v2859_v25, %v555_v22  ;;  %v2874_v30 = vadd.f32 %v572_v26, %v556_v23  ;;  %v2881_v33 = vld [vmem:[%s2801_s27 + $0x38] sm:$0xff]  ;;  %v2894_v37 = vld [vmem:[%s2791_s18 + $0x30] sm:$0xff]  ;;  %v2902_v40 = vadd.f32 %v2878_v32, %v557_v27  ;;  %v559_v42 = vld [vmem:[%s2796_s22 + $0x40] sm:$0xff]  ;;  %v1626_v50 = vstv %s2887_s30  ;;  %p1171_p4 = scmp.eq.s32.totalorder %s1170_s10, 1  ;;  %s2162_s30 = sshll.u32 %s2745_s17, 4 }
  0x33   : > { %2404 = vmatpush3.bf16.xpose.msk.msra.mxu1 %vm2827_vm1, %v2367_v15  ;;  %2370 = vmatpush3.bf16.msra.mxu0 %v2367_v15  ;;  %v1624_v36 = vstv %s2865_s0  ;;  %v2897_v38 = vld [vmem:[%s2791_s18 + $0x38] sm:$0xff]  ;;  %v2905_v41 = vadd.f32 %v2881_v33, %v558_v31  ;;  %v560_v43 = vld [vmem:[%s2796_s22 + $0x48] sm:$0xff]  ;;  %v2910_v44 = vld [vmem:[%s2801_s27 + $0x40] sm:$0xff]  ;;  %v770_v62 = vsel %vm760_vm0, %v747_v48, 0.0  ;;  %v749_v63 = vmul.f32 %v572_v26, %v572_v26  ;;  %s3784_s10 = scalar_lea.hbm %s3835_s9, %s2162_s30  ;;  %s2670_s17 = smov [#allocation4]  }
  0x34   : > { %416 = vmax.xlane.f32.xlu1 %v2837_v16  ;;  %414 = vmax.xlane.f32.xlu0 %v2844_v19  ;;  %v2375_v39 = vpack.c.bf16 %v2874_v30, %v2872_v29  ;;  %v2913_v45 = vld [vmem:[%s2801_s27 + $0x48] sm:$0xff]  ;;  %v1625_v47 = vsel %vm1623_vm2, %v1624_v36, 1.0  ;;  %v2928_v53 = vadd.f32 %v2910_v44, %v559_v42  ;;  %v561_v55 = vld [vmem:[%s2796_s22 + $0x50] sm:$0xff]  ;;  %v562_v58 = vld [vmem:[%s2796_s22 + $0x58] sm:$0xff]  ;;  %v767_v13 = vsel %vm760_vm0, %v746_v51, 0.0 }
  0x35   : > { %2407 = vmatprep.subr.msk.bf16.mxu1 %vm2827_vm1, %v2371_v28  ;;  %2372 = vmatprep.subr.bf16.mxu0 %v2371_v28  ;;  %v2925_v52 = vpack.c.bf16 %v2905_v41, %v2902_v40  ;;  %v2931_v54 = vadd.f32 %v2913_v45, %v560_v43  ;;  %v2935_v56 = vld [vmem:[%s2801_s27 + $0x50] sm:$0xff]  ;;  %v2939_v57 = vsel %vm1622_vm3, %v1626_v50, %v1625_v47  ;;  %v2945_v59 = vld [vmem:[%s2801_s27 + $0x58] sm:$0xff]  ;;  %v563_v5 = vld [vmem:[%s2796_s22 + $0x60] sm:$0xff]  ;;  %v776_v18 = vsel %vm760_vm0, %v749_v63, 0.0 }
  0x36   : > { %v1628_v60 = vmul.f32 %v2939_v57, %v2815_v8  ;;  %v2953_v61 = vadd.f32 %v2935_v56, %v561_v55  ;;  %v2961_v4 = vadd.f32 %v2945_v59, %v562_v58  ;;  %v2965_v6 = vld [vmem:[%s2801_s27 + $0x60] sm:$0xff]  ;;  %v748_v14 = vmul.f32 %v2859_v25, %v2859_v25  ;;  %v564_v15 = vld [vmem:[%s2796_s22 + $0x68] sm:$0xff]  ;;  %v565_v27 = vld [vmem:[%s2796_s22 + $0x70] sm:$0xff] }
  0x37   : > { %2374 = vmatpush3.bf16.msra.mxu0 %v2371_v28  ;;  %v2958_v3 = vpack.c.bf16 %v2931_v54, %v2928_v53  ;;  %v2973_v17 = vld [vmem:[%s2801_s27 + $0x68] sm:$0xff]  ;;  %v2979_v22 = vadd.f32 %v2965_v6, %v563_v5  ;;  %v751_v23 = vmul.f32 %v2881_v33, %v2881_v33  ;;  %v750_v31 = vmul.f32 %v2878_v32, %v2878_v32  ;;  %v566_v34 = vld [vmem:[%s2796_s22 + $0x78] sm:$0xff]  ;;  %v2996_v35 = vld [vmem:[%s2801_s27 + $0x70] sm:$0xff]  ;;  %s2100_s22 = sshll.u32 %s2780_s28, 2 }
  0x38   : > { %2376 = vmatprep.subr.bf16.mxu0 %v2375_v39  ;;  %418 = vmax.xlane.f32.xlu0 %v2894_v37  ;;  %v2387_v25 = vpack.c.bf16 %v2961_v4, %v2953_v61  ;;  %v2986_v26 = vadd.f32 %v2973_v17, %v564_v15  ;;  %v2999_v33 = vld [vmem:[%s2801_s27 + $0x78] sm:$0xff]  ;;  %v1176_v32 = vmul.f32 %v2817_v9, %v2817_v9  ;;  %s3079_s11 = scalar_lea.vmem %s3830_s4, %s2100_s22  ;;  %s397_s18 = scalar_lea.vmem %s3832_s6, %s2100_s22 }
  0x39   : > { %420 = vmax.xlane.f32.xlu1 %v2897_v38  ;;  %2343 = vmatprep.mubr.msk.f32.mxu1 %vm760_vm0, %v1628_v60  ;;  %v782_v36 = vsel %vm760_vm0, %v751_v23, 0.0  ;;  %v3015_v43 = vadd.f32 %v2996_v35, %v565_v27  ;;  %v779_v47 = vsel %vm760_vm0, %v750_v31, 0.0  ;;  %v1177_v50 = vmul.f32 %v2846_v20, %v2846_v20  ;;  %v3091_v31 = vld [vmem:[%s397_s18] sm:$0x7]  ;;  %s393_s22 = scalar_lea.vmem %s3831_s5, %s2780_s28 }
  0x3a   : > { %v3012_v42 = vpack.c.bf16 %v2986_v26, %v2979_v22  ;;  %v1194_v48 = vsel %vm760_vm0, %v1176_v32, 0.0  ;;  %v752_v55 = vmul.f32 %v2910_v44, %v2910_v44  ;;  %v1178_v60 = vmul.f32 %v2848_v21, %v2848_v21 }
  0x3b   : > { %2410 = vmatpush3.bf16.xpose.msk.msra.mxu1 %vm2827_vm1, %v2371_v28  ;;  %2378 = vmatpush3.bf16.msra.mxu0 %v2375_v39  ;;  %v773_v28 = vsel %vm760_vm0, %v748_v14, 0.0  ;;  %v1197_v58 = vsel %vm760_vm0, %v1177_v50, 0.0  ;;  %v1179_v63 = vmul.f32 %v2872_v29, %v2872_v29  ;;  %v1180_v14 = vmul.f32 %v2874_v30, %v2874_v30 }
  0x3c   : > { %2413 = vmatprep.subr.msk.bf16.mxu1 %vm2827_vm1, %v2375_v39  ;;  %2380 = vmatprep.subr.bf16.mxu0 %v2925_v52  ;;  %v785_v44 = vsel %vm760_vm0, %v752_v55, 0.0  ;;  %v756_v27 = vmul.f32 %v2965_v6, %v2965_v6  ;;  %v1631_v12 = vmul.f32 %v2939_v57, %v2848_v21 }
  0x3d   : > { %765 = vadd.xlane.f32.xlu1 %v764_v46  ;;  %762 = vadd.xlane.f32.xlu0 %v761_v49  ;;  %v3018_v46 = vadd.f32 %v2999_v33, %v566_v34 }
  0x3e   : > { %v797_v34 = vsel %vm760_vm0, %v756_v27, 0.0  ;;  %v1188_v27 = vmul.f32 %v2986_v26, %v2986_v26 }
  0x3f   : > { %2382 = vmatpush3.bf16.msra.mxu0 %v2925_v52  ;;  %v3025_v49 = vpack.c.bf16 %v3018_v46, %v3015_v43 }
  0x40   : > { %2384 = vmatprep.subr.bf16.mxu0 %v2958_v3 }
  0x41   : > { %771 = vadd.xlane.f32.xlu1 %v770_v62  ;;  %768 = vadd.xlane.f32.xlu0 %v767_v13  ;;  %v1200_v62 = vsel %vm760_vm0, %v1178_v60, 0.0  ;;  %v754_v13 = vmul.f32 %v2935_v56, %v2935_v56  ;;  %v755_v56 = vmul.f32 %v2945_v59, %v2945_v59  ;;  %v3085_v59 = vshrl.u32 %v1019_v7, 7 }
  0x43   : > { %2416 = vmatpush3.bf16.xpose.msk.msra.mxu1 %vm2827_vm1, %v2375_v39  ;;  %2386 = vmatpush3.bf16.msra.mxu0 %v2958_v3  ;;  %v1175_v39 = vmul.f32 %v2815_v8, %v2815_v8  ;;  %v791_v15 = vsel %vm760_vm0, %v754_v13, 0.0  ;;  %v794_v23 = vsel %vm760_vm0, %v755_v56, 0.0  ;;  %v3838_v32 = vsub.s32 0, %v3085_v59 }
  0x44   : > { %2419 = vmatprep.subr.msk.bf16.mxu1 %vm2827_vm1, %v2925_v52  ;;  %2388 = vmatprep.subr.bf16.mxu0 %v2387_v25  ;;  %v3837_v7 = vsub.s32 2, %v3085_v59  ;;  %v1186_v13 = vmul.f32 %v2961_v4, %v2961_v4  ;;  %v1187_v56 = vmul.f32 %v2979_v22, %v2979_v22 }
  0x45   : > { %777 = vadd.xlane.f32.xlu1 %v776_v18  ;;  %774 = vadd.xlane.f32.xlu0 %v773_v28  ;;  %v1191_v51 = vsel %vm760_vm0, %v1175_v39, 0.0  ;;  %v1181_v18 = vmul.f32 %v2902_v40, %v2902_v40  ;;  %v969_v28 = vld [vmem:[%s3079_s11] sm:$0x7] }
  0x46   : > { %v3102_v39 = vrot.slane %v969_v28, %v3838_v32 }
  0x47   : > { %2390 = vmatpush3.bf16.msra.mxu0 %v2387_v25  ;;  %v1209_v6 = vsel %vm760_vm0, %v1181_v18, 0.0  ;;  %v1634_v18 = vmul.f32 %v2939_v57, %v2902_v40 }
  0x48   : > { %2392 = vmatprep.subr.bf16.mxu0 %v3012_v42 }
  0x49   : > { %783 = vadd.xlane.f32.xlu1 %v782_v36  ;;  %780 = vadd.xlane.f32.xlu0 %v779_v47  ;;  %v757_v36 = vmul.f32 %v2973_v17, %v2973_v17  ;;  %v3106_v47 = vrot.slane %v969_v28, %v3837_v7  ;;  %v1183_v17 = vmul.f32 %v2928_v53, %v2928_v53 }
  0x4a   : > { %v1637_v28 = vmul.f32 %v2939_v57, %v2931_v54 }
  0x4b   : > { %2422 = vmatpush3.bf16.xpose.msk.msra.mxu1 %vm2827_vm1, %v2925_v52  ;;  %2394 = vmatpush3.bf16.msra.mxu0 %v3012_v42  ;;  %v753_v52 = vmul.f32 %v2913_v45, %v2913_v45  ;;  %v1203_v45 = vsel %vm760_vm0, %v1179_v63, 0.0  ;;  %v800_v50 = vsel %vm760_vm0, %v757_v36, 0.0  ;;  %v1215_v55 = vsel %vm760_vm0, %v1183_v17, 0.0  ;;  %v992_v17 = vld [vmem:[%s3833_s7 + $0x8] sm:$0xff] }
  0x4c   : > { %2425 = vmatprep.subr.msk.bf16.mxu1 %vm2827_vm1, %v2958_v3  ;;  %2396 = vmatprep.subr.bf16.mxu0 %v3025_v49  ;;  %v1185_v63 = vmul.f32 %v2953_v61, %v2953_v61  ;;  %v1189_v36 = vmul.f32 %v3015_v43, %v3015_v43 }
  0x4d   : > { %1195 = vadd.xlane.f32.xlu1 %v1194_v48  ;;  %1192 = vadd.xlane.f32.xlu0 %v1191_v51  ;;  %v788_v5 = vsel %vm760_vm0, %v753_v52, 0.0  ;;  %v758_v51 = vmul.f32 %v2996_v35, %v2996_v35  ;;  %v759_v35 = vmul.f32 %v2999_v33, %v2999_v33  ;;  %v1184_v52 = vmul.f32 %v2931_v54, %v2931_v54 }
  0x4f   : > { %2398 = vmatpush3.bf16.msra.mxu0 %v3025_v49  ;;  %v803_v60 = vsel %vm760_vm0, %v758_v51, 0.0  ;;  %v1218_v33 = vsel %vm760_vm0, %v1184_v52, 0.0  ;;  %v1233_v51 = vsel %vm760_vm0, %v1189_v36, 0.0  ;;  %v995_v52 = vld [vmem:[%s3834_s8] sm:$0xff] }
  0x50   : > { %2285 = vmatprep.subr.msk.mxu0 %vm1312_vm4, %v3091_v31 }
  0x51   : > { %1198 = vadd.xlane.f32.xlu1 %v1197_v58  ;;  %786 = vadd.xlane.f32.xlu0 %v785_v44  ;;  %v1190_v58 = vmul.f32 %v3018_v46, %v3018_v46  ;;  %v806_v44 = vsel %vm760_vm0, %v759_v35, 0.0  ;;  %v1642_v35 = vmul.f32 %v2939_v57, %v3015_v43 }
  0x53   : > { %2428 = vmatpush3.bf16.xpose.msk.msra.mxu1 %vm2827_vm1, %v2958_v3  ;;  %v1206_v3 = vsel %vm760_vm0, %v1180_v14, 0.0  ;;  %v1633_v14 = vmul.f32 %v2939_v57, %v2874_v30 }
  0x54   : > { %2431 = vmatprep.subr.msk.bf16.mxu1 %vm2827_vm1, %v2387_v25 }
  0x55   : > { %1201 = vadd.xlane.f32.xlu1 %v1200_v62  ;;  %789 = vadd.xlane.f32.xlu0 %v788_v5  ;;  %v1629_v62 = vmul.f32 %v2939_v57, %v2817_v9  ;;  %v1630_v5 = vmul.f32 %v2939_v57, %v2846_v20 }
  0x59   : > { %1204 = vadd.xlane.f32.xlu1 %v1203_v45  ;;  %792 = vadd.xlane.f32.xlu0 %v791_v15  ;;  %v1632_v45 = vmul.f32 %v2939_v57, %v2872_v29  ;;  %v1224_v15 = vsel %vm760_vm0, %v1186_v13, 0.0 }
  0x5b   : > { %2434 = vmatpush3.bf16.xpose.msk.msra.mxu1 %vm2827_vm1, %v2387_v25  ;;  %v1182_v25 = vmul.f32 %v2905_v41, %v2905_v41 }
  0x5c   : > { %2437 = vmatprep.subr.msk.bf16.mxu1 %vm2827_vm1, %v3012_v42 }
  0x5d   : > { %1207 = vadd.xlane.f32.xlu1 %v1206_v3  ;;  %795 = vadd.xlane.f32.xlu0 %v794_v23  ;;  %v1212_v48 = vsel %vm760_vm0, %v1182_v25, 0.0  ;;  %v1635_v3 = vmul.f32 %v2939_v57, %v2905_v41  ;;  %v1227_v23 = vsel %vm760_vm0, %v1187_v56, 0.0  ;;  %v991_v25 = vld [vmem:[%s3833_s7] sm:$0xff] }
  0x61   : > { %1210 = vadd.xlane.f32.xlu1 %v1209_v6  ;;  %798 = vadd.xlane.f32.xlu0 %v797_v34  ;;  %v1636_v6 = vmul.f32 %v2939_v57, %v2928_v53  ;;  %v1230_v34 = vsel %vm760_vm0, %v1188_v27, 0.0 }
  0x63   : > { %2440 = vmatpush3.bf16.xpose.msk.msra.mxu1 %vm2827_vm1, %v3012_v42  ;;  %v1236_v42 = vsel %vm760_vm0, %v1190_v58, 0.0  ;;  %v993_v58 = vld [vmem:[%s3833_s7 + $0x10] sm:$0xff] }
  0x64   : > { %2443 = vmatprep.subr.msk.bf16.mxu1 %vm2827_vm1, %v3025_v49 }
  0x65   : > { %1213 = vadd.xlane.f32.xlu1 %v1212_v48  ;;  %801 = vadd.xlane.f32.xlu0 %v800_v50  ;;  %v1638_v48 = vmul.f32 %v2939_v57, %v2953_v61  ;;  %v1639_v50 = vmul.f32 %v2939_v57, %v2961_v4 }
  0x69   : > { %1216 = vadd.xlane.f32.xlu1 %v1215_v55  ;;  %804 = vadd.xlane.f32.xlu0 %v803_v60  ;;  %v1640_v55 = vmul.f32 %v2939_v57, %v2979_v22  ;;  %v1641_v60 = vmul.f32 %v2939_v57, %v2986_v26 }
  0x6b   : > { %2446 = vmatpush3.bf16.xpose.msk.msra.mxu1 %vm2827_vm1, %v3025_v49  ;;  %v1221_v49 = vsel %vm760_vm0, %v1185_v63, 0.0 }
  0x6d   : > { %1237 = vadd.xlane.f32.xlu1 %v1236_v42  ;;  %807 = vadd.xlane.f32.xlu0 %v806_v44  ;;  %v994_v42 = vld [vmem:[%s3833_s7 + $0x18] sm:$0xff]  ;;  %v1643_v44 = vmul.f32 %v2939_v57, %v3018_v46 }
  0x71   : > { %1219 = vadd.xlane.f32.xlu0 %v1218_v33 }
  0x72   : > { %2344 = vmatmul.mubr.msk.f32.vlgmr.msra.gmra.mrb[0].mxu1 %vm760_vm0, %v1629_v62  ;;  %v996_v62 = vld [vmem:[%s3834_s8 + $0x8] sm:$0xff] }
  0x73   : > { %2346 = vmatprep.mubr.msk.f32.mxu1 %vm760_vm0, %v1630_v5 }
  0x75   : > { %1222 = vadd.xlane.f32.xlu0 %v1221_v49 }
  0x76   : > { %2347 = vmatmul.mubr.msk.f32.gmra.mrb[2].mxu1 %vm760_vm0, %v1631_v12 }
  0x77   : > { %2349 = vmatprep.mubr.msk.f32.mxu1 %vm760_vm0, %v1632_v45 }
  0x79   : > { %1225 = vadd.xlane.f32.xlu0 %v1224_v15 }
  0x7a   : > { %2350 = vmatmul.mubr.msk.f32.gmra.mrb[4].mxu1 %vm760_vm0, %v1633_v14 }
  0x7b   : > { %2352 = vmatprep.mubr.msk.f32.mxu1 %vm760_vm0, %v1634_v18 }
  0x7d   : > { %1228 = vadd.xlane.f32.xlu0 %v1227_v23 }
  0x7e   : > { %2353 = vmatmul.mubr.msk.f32.gmra.mrb[6].mxu1 %vm760_vm0, %v1635_v3  ;;  %1001 = vperm.xlu1 %2507, %v991_v25  }
  0x7f   : > { %2355 = vmatprep.mubr.msk.f32.mxu1 %vm760_vm0, %v1636_v6 }
  0x81   : > { %1231 = vadd.xlane.f32.xlu0 %v1230_v34 }
  0x82   : > { %2356 = vmatmul.mubr.msk.f32.gmra.mrb[8].mxu1 %vm760_vm0, %v1637_v28  ;;  %1006 = vperm.xlu1 %2507, %v992_v17  }
  0x83   : > { %2358 = vmatprep.mubr.msk.f32.mxu1 %vm760_vm0, %v1638_v48 }
  0x85   : > { %1234 = vadd.xlane.f32.xlu0 %v1233_v51 }
  0x86   : > { %2359 = vmatmul.mubr.msk.f32.gmra.mrb[10].mxu1 %vm760_vm0, %v1639_v50  ;;  %1011 = vperm.xlu1 %2507, %v993_v58  }
  0x87   : > { %2361 = vmatprep.mubr.msk.f32.mxu1 %vm760_vm0, %v1640_v55 }
  0x8a   : > { %2362 = vmatmul.mubr.msk.f32.gmra.mrb[12].mxu1 %vm760_vm0, %v1641_v60  ;;  %1016 = vperm.xlu1 %2507, %v994_v42  }
  0x8b   : > { %2364 = vmatprep.mubr.msk.f32.mxu1 %vm760_vm0, %v1642_v35 }
  0x8e   : > { %2365 = vmatmul.mubr.msk.f32.gmra.mrb[14].mxu1 %vm760_vm0, %v1643_v44  ;;  %1029 = vperm.xlu1 %2507, %v995_v52  }
  0x92   : > { %1034 = vperm.xlu1 %2507, %v996_v62  }
  0xb9   : > { %v411_v33 = vpop.xlane.xlu1 %410  ;;  %v407_v63 = vpop.xlane.xlu0 %406 }
  0xba   : > { %v424_v5 = vsub.f32 %v2804_v1, %v411_v33  ;;  %v422_v57 = vsub.f32 %v2807_v2, %v407_v63 }
  0xbc   : > { %v434_v12 = vmul.f32 1.442695, %v424_v5  ;;  %v430_v49 = vmul.f32 1.442695, %v422_v57 }
  0xbd   : > { %v413_v13 = vpop.xlane.xlu1 %412  ;;  %v409_v45 = vpop.xlane.xlu0 %408 }
  0xbe   : > { %2509 = vpow2.f32 %v434_v12  ;;  %v425_v14 = vsub.f32 %v2820_v10, %v413_v13  ;;  %v3216_v15 = vsub.f32 %v2823_v11, %v409_v45 }
  0xbf   : > { %2511 = vpow2.f32 %v430_v49 }
  0xc0   : > { %v436_v56 = vmul.f32 1.442695, %v425_v14  ;;  %v432_v18 = vmul.f32 1.442695, %v3216_v15 }
  0xc1   : > { %v417_v3 = vpop.xlane.xlu1 %416  ;;  %v415_v23 = vpop.xlane.xlu0 %414 }
  0xc2   : > { %2513 = vpow2.f32 %v436_v56  ;;  %v427_v1 = vsub.f32 %v2837_v16, %v417_v3  ;;  %v426_v2 = vsub.f32 %v2844_v19, %v415_v23 }
  0xc3   : > { %2515 = vpow2.f32 %v432_v18 }
  0xc4   : > { %v440_v27 = vmul.f32 1.442695, %v427_v1  ;;  %v438_v6 = vmul.f32 1.442695, %v426_v2 }
  0xc5   : > { %v419_v25 = vpop.xlane.xlu0 %418 }
  0xc6   : > { %v421_v28 = vpop.xlane.xlu1 %420  ;;  %2517 = vpow2.f32 %v440_v27  ;;  %v428_v10 = vsub.f32 %v2894_v37, %v419_v25 }
  0xc7   : > { %v3223_v11 = vsub.f32 %v2897_v38, %v421_v28  ;;  %2519 = vpow2.f32 %v438_v6 }
  0xc8   : > { %v2510_v34 = vpop.eup %2509  ;;  %v442_v36 = vmul.f32 1.442695, %v428_v10 }
  0xc9   : > { %v444_v48 = vmul.f32 1.442695, %v3223_v11  ;;  %v2512_v17 = vpop.eup %2511  ;;  %v3230_v50 = vmul.f32 %v2510_v34, %v424_v5 }
  0xca   : > { %v3226_v16 = vpop.xlane.xlu0 %762  ;;  %v3228_v19 = vpop.xlane.xlu1 %765  ;;  %2521 = vpow2.f32 %v442_v36  ;;  %446 = vadd.xlane.f32.xlu0 %v2512_v17  ;;  %2273 = vmatprep.mubr.f32.mxu0 %v2512_v17  ;;  %v3233_v38 = vmul.f32 %v2512_v17, %v422_v57 }
  0xcb   : > { %2523 = vpow2.f32 %v444_v48  ;;  %vm811_vm6 = vcmp.eq.f32.partialorder %v3226_v16, inf  ;;  %vm813_vm7 = vcmp.eq.f32.partialorder %v3226_v16, 0.0  ;;  %v814_v63 = vand.u32 2147483648, %v3226_v16 }
  0xcc   : > { %v2514_v37 = vpop.eup %2513  ;;  %2525 = vrsqrt.f32 %v3226_v16  ;;  %vm818_vm8 = vcmp.eq.f32.partialorder %v3228_v19, inf  ;;  %vm820_vm9 = vcmp.eq.f32.partialorder %v3228_v19, 0.0  ;;  %v821_v49 = vand.u32 2147483648, %v3228_v19 }
  0xcd   : > { %v2516_v51 = vpop.eup %2515  ;;  %2527 = vrsqrt.f32 %v3228_v19  ;;  %v3240_v60 = vmul.f32 %v2514_v37, %v425_v14 }
  0xce   : > { %v3235_v55 = vpop.xlane.xlu0 %768  ;;  %v3238_v58 = vpop.xlane.xlu1 %771  ;;  %450 = vadd.xlane.f32.xlu0 %v2510_v34  ;;  %448 = vadd.xlane.f32.xlu1 %v2516_v51  ;;  %v487_v12 = vmul.f32 %v2516_v51, %v3216_v15 }
  0xcf   : > { %2529 = vrsqrt.f32 %v3235_v55  ;;  %2274 = vmatmul.mubr.f32.vlgmr.msra.gmra.mrb[0].mxu0 %v2516_v51  ;;  %vm825_vm10 = vcmp.eq.f32.partialorder %v3235_v55, inf  ;;  %vm827_vm11 = vcmp.eq.f32.partialorder %v3235_v55, 0.0  ;;  %v828_v18 = vand.u32 2147483648, %v3235_v55 }
  0xd0   : > { %2531 = vrsqrt.f32 %v3238_v58  ;;  %v2518_v35 = vpop.eup %2517  ;;  %2276 = vmatprep.mubr.f32.mxu0 %v2510_v34  ;;  %2286 = vmatpush3.msk.msra.mxu0 %vm1312_vm4, %v3091_v31  ;;  %vm832_vm12 = vcmp.eq.f32.partialorder %v3238_v58, inf  ;;  %vm834_vm13 = vcmp.eq.f32.partialorder %v3238_v58, 0.0 }
  0xd1   : > { %v2520_v42 = vpop.eup %2519  ;;  %v3250_v62 = vmul.f32 %v2518_v35, %v427_v1 }
  0xd2   : > { %v3246_v44 = vpop.xlane.xlu0 %774  ;;  %v3248_v52 = vpop.xlane.xlu1 %777  ;;  %452 = vadd.xlane.f32.xlu1 %v2514_v37  ;;  %454 = vadd.xlane.f32.xlu0 %v2520_v42  ;;  %v3258_v5 = vmul.f32 %v2520_v42, %v426_v2  ;;  %v835_v2 = vand.u32 2147483648, %v3238_v58 }
  0xd3   : > { %2533 = vrsqrt.f32 %v3246_v44  ;;  %2277 = vmatmul.mubr.f32.gmra.mrb[2].mxu0 %v2514_v37  ;;  %vm839_vm14 = vcmp.eq.f32.partialorder %v3246_v44, inf  ;;  %vm841_vm15 = vcmp.eq.f32.partialorder %v3246_v44, 0.0  ;;  %vm846_vm1 = vcmp.eq.f32.partialorder %v3248_v52, inf }
  0xd4   : > { %2535 = vrsqrt.f32 %v3248_v52  ;;  %v2522_v33 = vpop.eup %2521  ;;  %2279 = vmatprep.mubr.f32.mxu0 %v2520_v42  ;;  %vm848_vm4 = vcmp.eq.f32.partialorder %v3248_v52, 0.0 }
  0xd5   : > { %v2524_v57 = vpop.eup %2523  ;;  %v3267_v14 = vmul.f32 %v2522_v33, %v428_v10  ;;  %v842_v10 = vand.u32 2147483648, %v3246_v44 }
  0xd6   : > { %v3263_v13 = vpop.xlane.xlu0 %780  ;;  %v3265_v45 = vpop.xlane.xlu1 %783  ;;  %456 = vadd.xlane.f32.xlu1 %v2518_v35  ;;  %458 = vadd.xlane.f32.xlu0 %v2522_v33  ;;  %v3281_v27 = vmul.f32 %v2524_v57, %v3223_v11 }
  0xd7   : > { %v2526_v56 = vpop.eup %2525  ;;  %2537 = vrsqrt.f32 %v3263_v13  ;;  %2280 = vmatmul.mubr.f32.gmra.mrb[4].mxu0 %v2518_v35 }
  0xd8   : > { %v2528_v15 = vpop.eup %2527  ;;  %v810_v3 = vmul.f32 %v2526_v56, %v3226_v16  ;;  %2539 = vrsqrt.f32 %v3265_v45  ;;  %2282 = vmatprep.mubr.f32.mxu0 %v2522_v33 }
  0xd9   : > { %v2530_v23 = vpop.eup %2529  ;;  %v817_v1 = vmul.f32 %v2528_v15, %v3228_v19 }
  0xda   : > { %v2532_v6 = vpop.eup %2531  ;;  %v812_v25 = vsel %vm811_vm6, %v3226_v16, %v810_v3  ;;  %v824_v28 = vmul.f32 %v2530_v23, %v3235_v55  ;;  %v3289_v34 = vpop.xlane.xlu0 %1192  ;;  %460 = vadd.xlane.f32.xlu1 %v2524_v57  ;;  %496 = vadd.xlane.f32.xlu0 %v487_v12  ;;  %vm853_vm6 = vcmp.eq.f32.partialorder %v3263_v13, inf }
  0xdb   : > { %v3291_v36 = vpop.xlane.xlu1 %1195  ;;  %v815_v11 = vsel %vm813_vm7, %v814_v63, %v812_v25  ;;  %v819_v48 = vsel %vm818_vm8, %v3228_v19, %v817_v1  ;;  %v831_v17 = vmul.f32 %v2532_v6, %v3238_v58  ;;  %2283 = vmatmul.mubr.f32.gmra.mrb[6].mxu0 %v2524_v57  ;;  %v849_v57 = vand.u32 2147483648, %v3248_v52 }
  0xdc   : > { %v921_v37 = vsel %vm526_vm5, %v815_v11, 0.0  ;;  %v826_v51 = vsel %vm825_vm10, %v3235_v55, %v824_v28  ;;  %v822_v35 = vsel %vm820_vm9, %v821_v49, %v819_v48  ;;  %2287 = vmatprep.mubr.msk.f32.mxu0 %vm760_vm0, %v2815_v8  ;;  %vm855_vm7 = vcmp.eq.f32.partialorder %v3263_v13, 0.0 }
  0xdd   : > { %v2534_v16 = vpop.eup %2533  ;;  %v829_v42 = vsel %vm827_vm11, %v828_v18, %v826_v51  ;;  %v922_v33 = vsel %vm526_vm5, %v822_v35, 0.0  ;;  %v833_v63 = vsel %vm832_vm12, %v3238_v58, %v831_v17  ;;  %v856_v58 = vand.u32 2147483648, %v3263_v13 }
  0xde   : > { %v2536_v12 = vpop.eup %2535  ;;  %v924_v19 = vsel %vm526_vm5, %v829_v42, 0.0  ;;  %v838_v49 = vmul.f32 %v2534_v16, %v3246_v44  ;;  %v923_v56 = vadd.f32 %v922_v33, %v921_v37  ;;  %v836_v8 = vsel %vm834_vm13, %v835_v2, %v833_v63  ;;  %v787_v15 = vpop.xlane.xlu0 %786 }
  0xdf   : > { %v3320_v55 = vpop.xlane.xlu1 %1198  ;;  %v926_v18 = vsel %vm526_vm5, %v836_v8, 0.0  ;;  %v845_v3 = vmul.f32 %v2536_v12, %v3248_v52  ;;  %2541 = vrsqrt.f32 %v787_v15  ;;  %2288 = vmatmul.mubr.msk.f32.vlgmr.msra.gmra.mrb[8].mxu0 %vm760_vm0, %v2817_v9  ;;  %vm860_vm8 = vcmp.eq.f32.partialorder %v3265_v45, inf }
  0xe0   : > { %v840_v23 = vsel %vm839_vm14, %v3246_v44, %v838_v49  ;;  %v925_v1 = vadd.f32 %v924_v19, %v923_v56  ;;  %2290 = vmatprep.mubr.msk.f32.mxu0 %vm760_vm0, %v2846_v20  ;;  %v863_v25 = vand.u32 2147483648, %v3265_v45  ;;  %vm862_vm9 = vcmp.eq.f32.partialorder %v3265_v45, 0.0 }
  0xe1   : > { %v2538_v2 = vpop.eup %2537  ;;  %v843_v6 = vsel %vm841_vm15, %v842_v10, %v840_v23  ;;  %v847_v9 = vsel %vm846_vm1, %v3248_v52, %v845_v3  ;;  %vm867_vm10 = vcmp.eq.f32.partialorder %v787_v15, inf  ;;  %v870_v49 = vand.u32 2147483648, %v787_v15 }
  0xe2   : > { %v2540_v28 = vpop.eup %2539  ;;  %v928_v11 = vsel %vm526_vm5, %v843_v6, 0.0  ;;  %v852_v48 = vmul.f32 %v2538_v2, %v3263_v13  ;;  %v927_v17 = vadd.f32 %v926_v18, %v925_v1  ;;  %v850_v20 = vsel %vm848_vm4, %v849_v57, %v847_v9  ;;  %v790_v37 = vpop.xlane.xlu0 %789 }
  0xe3   : > { %v3345_v44 = vpop.xlane.xlu1 %1201  ;;  %v930_v10 = vsel %vm526_vm5, %v850_v20, 0.0  ;;  %v859_v51 = vmul.f32 %v2540_v28, %v3265_v45  ;;  %2543 = vrsqrt.f32 %v790_v37  ;;  %2291 = vmatmul.mubr.msk.f32.gmra.mrb[10].mxu0 %vm760_vm0, %v2848_v21  ;;  %vm869_vm11 = vcmp.eq.f32.partialorder %v787_v15, 0.0 }
  0xe4   : > { %v854_v35 = vsel %vm853_vm6, %v3263_v13, %v852_v48  ;;  %v929_v16 = vadd.f32 %v928_v11, %v927_v17  ;;  %2293 = vmatprep.mubr.msk.f32.mxu0 %vm760_vm0, %v2872_v29  ;;  %vm874_vm12 = vcmp.eq.f32.partialorder %v790_v37, inf  ;;  %vm876_vm13 = vcmp.eq.f32.partialorder %v790_v37, 0.0 }
  0xe5   : > { %v857_v52 = vsel %vm855_vm7, %v856_v58, %v854_v35  ;;  %v861_v42 = vsel %vm860_vm8, %v3265_v45, %v859_v51  ;;  %v997_v45 = vld [vmem:[%s3834_s8 + $0x10] sm:$0xff]  ;;  %v877_v58 = vand.u32 2147483648, %v790_v37 }
  0xe6   : > { %v932_v33 = vsel %vm526_vm5, %v857_v52, 0.0  ;;  %v931_v63 = vadd.f32 %v930_v10, %v929_v16  ;;  %v864_v57 = vsel %vm862_vm9, %v863_v25, %v861_v42  ;;  %v793_v21 = vpop.xlane.xlu0 %792 }
  0xe7   : > { %v3363_v12 = vpop.xlane.xlu1 %1204  ;;  %v934_v19 = vsel %vm526_vm5, %v864_v57, 0.0  ;;  %2545 = vrsqrt.f32 %v793_v21  ;;  %2294 = vmatmul.mubr.msk.f32.gmra.mrb[12].mxu0 %vm760_vm0, %v2874_v30  ;;  %vm881_vm14 = vcmp.eq.f32.partialorder %v793_v21, inf  ;;  %v884_v28 = vand.u32 2147483648, %v793_v21 }
  0xe8   : > { %v933_v29 = vadd.f32 %v932_v33, %v931_v63  ;;  %2296 = vmatprep.mubr.msk.f32.mxu0 %vm760_vm0, %v2902_v40  ;;  %vm883_vm15 = vcmp.eq.f32.partialorder %v793_v21, 0.0 }
  0xe9   : > { %v2542_v13 = vpop.eup %2541 }
  0xea   : > { %v866_v56 = vmul.f32 %v2542_v13, %v787_v15  ;;  %v935_v8 = vadd.f32 %v934_v19, %v933_v29  ;;  %v796_v18 = vpop.xlane.xlu0 %795 }
  0xeb   : > { %v3373_v3 = vpop.xlane.xlu1 %1207  ;;  %2547 = vrsqrt.f32 %v796_v18  ;;  %2297 = vmatmul.mubr.msk.f32.gmra.mrb[14].mxu0 %vm760_vm0, %v2905_v41  ;;  %1039 = vperm.xlu1 %2507, %v997_v45   ;;  %vm888_vm1 = vcmp.eq.f32.partialorder %v796_v18, inf  ;;  %vm890_vm4 = vcmp.eq.f32.partialorder %v796_v18, 0.0 }
  0xec   : > { %v868_v30 = vsel %vm867_vm10, %v787_v15, %v866_v56  ;;  %2299 = vmatprep.mubr.msk.f32.mxu0 %vm760_vm0, %v2928_v53 }
  0xed   : > { %v2544_v23 = vpop.eup %2543  ;;  %v871_v40 = vsel %vm869_vm11, %v870_v49, %v868_v30 }
  0xee   : > { %v936_v1 = vsel %vm526_vm5, %v871_v40, 0.0  ;;  %v873_v2 = vmul.f32 %v2544_v23, %v790_v37  ;;  %v799_v6 = vpop.xlane.xlu0 %798 }
  0xef   : > { %v3380_v9 = vpop.xlane.xlu1 %1210  ;;  %2549 = vrsqrt.f32 %v799_v6  ;;  %2300 = vmatmul.mubr.msk.f32.gmra.mrb[16].mxu0 %vm760_vm0, %v2931_v54  ;;  %v937_v15 = vadd.f32 %v936_v1, %v935_v8  ;;  %vm895_vm6 = vcmp.eq.f32.partialorder %v799_v6, inf  ;;  %vm897_vm7 = vcmp.eq.f32.partialorder %v799_v6, 0.0 }
  0xf0   : > { %v875_v41 = vsel %vm874_vm12, %v790_v37, %v873_v2  ;;  %2302 = vmatprep.mubr.msk.f32.mxu0 %vm760_vm0, %v2953_v61  ;;  %v891_v61 = vand.u32 2147483648, %v796_v18 }
  0xf1   : > { %v2546_v25 = vpop.eup %2545  ;;  %v878_v53 = vsel %vm876_vm13, %v877_v58, %v875_v41  ;;  %vm1240_vm13 = vcmask 518144  }
  0xf2   : > { %v880_v11 = vmul.f32 %v2546_v25, %v793_v21  ;;  %v802_v48 = vpop.xlane.xlu0 %801  ;;  %v938_v20 = vsel %vm526_vm5, %v878_v53, 0.0 }
  0xf3   : > { %v3386_v17 = vpop.xlane.xlu1 %1213  ;;  %2551 = vrsqrt.f32 %v802_v48  ;;  %2303 = vmatmul.mubr.msk.f32.gmra.mrb[18].mxu0 %vm760_vm0, %v2961_v4  ;;  %v939_v37 = vadd.f32 %v938_v20, %v937_v15  ;;  %vm902_vm8 = vcmp.eq.f32.partialorder %v802_v48, inf  ;;  %vm904_vm9 = vcmp.eq.f32.partialorder %v802_v48, 0.0 }
  0xf4   : > { %v882_v54 = vsel %vm881_vm14, %v793_v21, %v880_v11  ;;  %2305 = vmatprep.mubr.msk.f32.mxu0 %vm760_vm0, %v2979_v22  ;;  %v898_v22 = vand.u32 2147483648, %v799_v6  ;;  %vm1139_vm14 = vcmask 523264  }
  0xf5   : > { %v2548_v10 = vpop.eup %2547  ;;  %v885_v51 = vsel %vm883_vm15, %v884_v28, %v882_v54  ;;  %vm980_vm15 = vcmask 516096  }
  0xf6   : > { %v887_v35 = vmul.f32 %v2548_v10, %v796_v18  ;;  %v805_v16 = vpop.xlane.xlu0 %804  ;;  %v940_v42 = vsel %vm526_vm5, %v885_v51, 0.0 }
  0xf7   : > { %v3393_v52 = vpop.xlane.xlu1 %1216  ;;  %2553 = vrsqrt.f32 %v805_v16  ;;  %2306 = vmatmul.mubr.msk.f32.gmra.mrb[20].mxu0 %vm760_vm0, %v2986_v26  ;;  %v941_v57 = vadd.f32 %v940_v42, %v939_v37  ;;  %vm911_vm10 = vcmp.eq.f32.partialorder %v805_v16, 0.0 }
  0xf8   : > { %v889_v4 = vsel %vm888_vm1, %v796_v18, %v887_v35  ;;  %2308 = vmatprep.mubr.msk.f32.mxu0 %vm760_vm0, %v3015_v43  ;;  %v905_v43 = vand.u32 2147483648, %v802_v48 }
  0xf9   : > { %v2550_v33 = vpop.eup %2549  ;;  %v892_v63 = vsel %vm890_vm4, %v891_v61, %v889_v4 }
  0xfa   : > { %v894_v21 = vmul.f32 %v2550_v33, %v799_v6  ;;  %v808_v19 = vpop.xlane.xlu0 %807  ;;  %v942_v13 = vsel %vm526_vm5, %v892_v63, 0.0 }
  0xfb   : > { %v3400_v29 = vpop.xlane.xlu1 %1237  ;;  %2555 = vrsqrt.f32 %v808_v19  ;;  %2309 = vmatmul.mubr.msk.f32.gmra.mrb[22].mxu0 %vm760_vm0, %v3018_v46  ;;  %v943_v45 = vadd.f32 %v942_v13, %v941_v57  ;;  %vm909_vm0 = vcmp.eq.f32.partialorder %v805_v16, inf  ;;  %vm916_vm11 = vcmp.eq.f32.partialorder %v808_v19, inf }
  0xfc   : > { %3860 = vst [vmem:[#allocation11_spill] sm:$0xff] %v3400_v29  ;;  %v896_v26 = vsel %vm895_vm6, %v799_v6, %v894_v21  ;;  %v912_v6 = vand.u32 2147483648, %v805_v16  ;;  %vm918_vm12 = vcmp.eq.f32.partialorder %v808_v19, 0.0 }
  0xfd   : > { %v2552_v49 = vpop.eup %2551  ;;  %v899_v56 = vsel %vm897_vm7, %v898_v22, %v896_v26 }
  0xfe   : > { %v901_v8 = vmul.f32 %v2552_v49, %v802_v48  ;;  %v944_v30 = vsel %vm526_vm5, %v899_v56, 0.0 }
  0xff   : > { %v1002_v18 = vpop.permute.xlu1 %1001  ;;  %v945_v1 = vadd.f32 %v944_v30, %v943_v45 }
 0x100   : > { %v3407_v23 = vmul.f32 %v3102_v39, %v1002_v18  ;;  %v1063_v40 = vmul.f32 %v3106_v47, %v1002_v18  ;;  %v903_v58 = vsel %vm902_vm8, %v802_v48, %v901_v8  ;;  %v919_v48 = vand.u32 2147483648, %v808_v19 }
 0x101   : > { %v2554_v2 = vpop.eup %2553  ;;  %v906_v46 = vsel %vm904_vm9, %v905_v43, %v903_v58 }
 0x102   : > { %3861 = vst [vmem:[#allocation12_spill] sm:$0xff] %v3407_v23  ;;  %v908_v41 = vmul.f32 %v2554_v2, %v805_v16  ;;  %v946_v25 = vsel %vm526_vm5, %v906_v46, 0.0 }
 0x103   : > { %v1007_v15 = vpop.permute.xlu1 %1006  ;;  %v947_v20 = vadd.f32 %v946_v25, %v945_v1 }
 0x104   : > { %v3412_v53 = vmul.f32 %v3102_v39, %v1007_v15  ;;  %v1064_v28 = vmul.f32 %v3106_v47, %v1007_v15  ;;  %v910_v11 = vsel %vm909_vm0, %v805_v16, %v908_v41 }
 0x105   : > { %v2556_v54 = vpop.eup %2555  ;;  %v913_v37 = vsel %vm911_vm10, %v912_v6, %v910_v11 }
 0x106   : > { %3862 = vst [vmem:[#allocation13_spill] sm:$0xff] %v3412_v53  ;;  %v915_v61 = vmul.f32 %v2556_v54, %v808_v19  ;;  %v948_v51 = vsel %vm526_vm5, %v913_v37, 0.0 }
 0x107   : > { %v1012_v10 = vpop.permute.xlu1 %1011  ;;  %v949_v33 = vadd.f32 %v948_v51, %v947_v20 }
 0x108   : > { %v3417_v35 = vmul.f32 %v3102_v39, %v1012_v10  ;;  %v3420_v42 = vmul.f32 %v3106_v47, %v1012_v10  ;;  %v917_v4 = vsel %vm916_vm11, %v808_v19, %v915_v61 }
 0x109   : > { %v920_v22 = vsel %vm918_vm12, %v919_v48, %v917_v4  ;;  %vm1890_vm12 = vcmask 1040384  }
 0x10a   : > { %3863 = vst [vmem:[#allocation14_spill] sm:$0xff] %v3417_v35  ;;  %v950_v63 = vsel %vm526_vm5, %v920_v22, 0.0 }
 0x10b   : > { %v1017_v16 = vpop.permute.xlu1 %1016  ;;  %v3429_v13 = vadd.f32 %v950_v63, %v949_v33 }
 0x10c   : > { %v3424_v57 = vmul.f32 %v3102_v39, %v1017_v16  ;;  %v3427_v21 = vmul.f32 %v3106_v47, %v1017_v16 }
 0x10e   : > { %3864 = vst [vmem:[#allocation15_spill] sm:$0xff] %v3424_v57 }
 0x10f   : > { %v1030_v26 = vpop.permute.xlu1 %1029  ;;  %494 = vadd.xlane.f32.xlu1 %v3233_v38  ;;  %v998_v38 = vld [vmem:[%s3834_s8 + $0x18] sm:$0xff] }
 0x110   : > { %v3432_v45 = vmul.f32 %v3106_v47, %v1030_v26  ;;  %v1059_v49 = vmul.f32 %v1030_v26, %v3102_v39 }
 0x112   : > { %3865 = vst [vmem:[#allocation16_spill] sm:$0xff] %v3432_v45  ;;  %v3438_v43 = vadd.f32 %v1063_v40, %v1059_v49  ;;  %v3457_v40 = vpop.xlane.xlu0 %1219 }
 0x113   : > { %v1035_v56 = vpop.permute.xlu1 %1034  ;;  %498 = vadd.xlane.f32.xlu1 %v3230_v50 }
 0x114   : > { %3866 = vst [vmem:[#allocation17_spill] sm:$0xff] %v3438_v43  ;;  %v3441_v8 = vmul.f32 %v3106_v47, %v1035_v56  ;;  %v1060_v18 = vmul.f32 %v1035_v56, %v3102_v39 }
 0x116   : > { %3867 = vst [vmem:[#allocation18_spill] sm:$0xff] %v3441_v8  ;;  %v3447_v58 = vadd.f32 %v1064_v28, %v1060_v18  ;;  %v3459_v6 = vpop.xlane.xlu0 %1222 }
 0x117   : > { %500 = vadd.xlane.f32.xlu1 %v3240_v60 }
 0x118   : > { %3868 = vst [vmem:[#allocation19_spill] sm:$0xff] %v3447_v58 }
 0x11a   : > { %v3465_v48 = vpop.xlane.xlu0 %1225 }
 0x11b   : > { %502 = vadd.xlane.f32.xlu1 %v3258_v5 }
 0x11f   : > { %504 = vadd.xlane.f32.xlu1 %v3250_v62 }
 0x123   : > { %506 = vadd.xlane.f32.xlu1 %v3267_v14 }
 0x127   : > { %508 = vadd.xlane.f32.xlu1 %v3281_v27 }
 0x138   : > { %1044 = vperm.xlu1 %2507, %v998_v38  }
 0x145   : > { %v2345_v50 = vpop.f32.mrb[0].mxu1 }
 0x146   : > { %v1758_v1 = vpop.f32.mrb[1].mxu1  ;;  %v1838_v5 = vmul.f32 2.0, %v2345_v50 }
 0x147   : > { %v1837_v60 = vmul.f32 2.0, %v1758_v1 }
 0x148   : > { %v1854_v25 = vsub.f32 %v3291_v36, %v1838_v5 }
 0x149   : > { %v2348_v2 = vpop.f32.mrb[2].mxu1  ;;  %v1853_v27 = vsub.f32 %v3289_v34, %v1837_v60 }
 0x14a   : > { %v1768_v46 = vpop.f32.mrb[3].mxu1  ;;  %v1840_v28 = vmul.f32 2.0, %v2348_v2  ;;  %v3471_v2 = vpop.xlane.xlu0 %1228 }
 0x14b   : > { %v1839_v20 = vmul.f32 2.0, %v1768_v46  ;;  %3869 = vst [vmem:[#allocation20_spill] sm:$0xff] %v3471_v2 }
 0x14c   : > { %v1856_v22 = vsub.f32 %v3345_v44, %v1840_v28 }
 0x14d   : > { %v2351_v62 = vpop.f32.mrb[4].mxu1  ;;  %v1855_v63 = vsub.f32 %v3320_v55, %v1839_v20 }
 0x14e   : > { %v1842_v41 = vmul.f32 2.0, %v2351_v62  ;;  %v1778_v14 = vpop.f32.mrb[5].mxu1 }
 0x14f   : > { %v1841_v15 = vmul.f32 2.0, %v1778_v14 }
 0x150   : > { %v1858_v11 = vsub.f32 %v3373_v3, %v1842_v41 }
 0x151   : > { %v1857_v54 = vsub.f32 %v3363_v12, %v1841_v15  ;;  %v2354_v37 = vpop.f32.mrb[6].mxu1 }
 0x152   : > { %v1870_v10 = vmin.f32 %v1854_v25, %v1858_v11  ;;  %v1844_v61 = vmul.f32 2.0, %v2354_v37  ;;  %v1788_v51 = vpop.f32.mrb[7].mxu1 }
 0x153   : > { %v1869_v4 = vmin.f32 %v1853_v27, %v1857_v54  ;;  %v1843_v33 = vmul.f32 2.0, %v1788_v51  ;;  %v3479_v54 = vpop.xlane.xlu0 %1231 }
 0x154   : > { %v1860_v16 = vsub.f32 %v3386_v17, %v1844_v61 }
 0x155   : > { %v1859_v26 = vsub.f32 %v3380_v9, %v1843_v33  ;;  %v2357_v49 = vpop.f32.mrb[8].mxu1 }
 0x156   : > { %v1872_v56 = vmin.f32 %v1856_v22, %v1860_v16  ;;  %v1846_v18 = vmul.f32 2.0, %v2357_v49  ;;  %v1798_v38 = vpop.f32.mrb[9].mxu1 }
 0x157   : > { %v1871_v50 = vmin.f32 %v1855_v63, %v1859_v26  ;;  %v1845_v1 = vmul.f32 2.0, %v1798_v38 }
 0x158   : > { %v1862_v46 = vsub.f32 %v3457_v40, %v1846_v18 }
 0x159   : > { %v1861_v60 = vsub.f32 %v3393_v52, %v1845_v1  ;;  %v2360_v5 = vpop.f32.mrb[10].mxu1 }
 0x15a   : > { %v1874_v62 = vmin.f32 %v1870_v10, %v1862_v46  ;;  %v1848_v41 = vmul.f32 2.0, %v2360_v5  ;;  %v1808_v14 = vpop.f32.mrb[11].mxu1  ;;  %v3485_v46 = vpop.xlane.xlu0 %1234 }
 0x15b   : > { %v1873_v27 = vmin.f32 %v1869_v4, %v1861_v60  ;;  %v1847_v15 = vmul.f32 2.0, %v1808_v14  ;;  %v3476_v28 = vpop.xlane.xlu1 %448 }
 0x15c   : > { %v1864_v25 = vsub.f32 %v3465_v48, %v1848_v41 }
 0x15d   : > { %v1863_v11 = vsub.f32 %v3459_v6, %v1847_v15  ;;  %v2363_v20 = vpop.f32.mrb[12].mxu1 }
 0x15e   : > { %v1876_v37 = vmin.f32 %v1872_v56, %v1864_v25  ;;  %v1850_v61 = vmul.f32 2.0, %v2363_v20  ;;  %v1818_v51 = vpop.f32.mrb[13].mxu1 }
 0x15f   : > { %v1875_v33 = vmin.f32 %v1871_v50, %v1863_v11  ;;  %v1849_v22 = vmul.f32 2.0, %v1818_v51  ;;  %v3482_v16 = vpop.xlane.xlu1 %452 }
 0x160   : > { %v1866_v10 = vsub.f32 %v3479_v54, %v1850_v61 }
 0x161   : > { %v1865_v4 = vsub.f32 %v3471_v2, %v1849_v22  ;;  %v2366_v63 = vpop.f32.mrb[14].mxu1 }
 0x162   : > { %v1878_v26 = vmin.f32 %v1874_v62, %v1866_v10  ;;  %v1852_v49 = vmul.f32 2.0, %v2366_v63  ;;  %v1828_v18 = vpop.f32.mrb[15].mxu1 }
 0x163   : > { %v1877_v38 = vmin.f32 %v1873_v27, %v1865_v4  ;;  %v1851_v1 = vmul.f32 2.0, %v1828_v18  ;;  %v3488_v60 = vpop.xlane.xlu1 %456 }
 0x164   : > { %v1868_v56 = vsub.f32 %v3400_v29, %v1852_v49 }
 0x165   : > { %v1881_v50 = vmin.f32 %v1877_v38, %v1878_v26  ;;  %v1867_v5 = vsub.f32 %v3485_v46, %v1851_v1 }
 0x166   : > { %v1880_v41 = vmin.f32 %v1876_v37, %v1868_v56  ;;  %v1239_v37 = vmul.f32 %v3091_v31, %v3091_v31 }
 0x167   : > { %v1879_v14 = vmin.f32 %v1875_v33, %v1867_v5  ;;  %v3491_v15 = vpop.xlane.xlu1 %460  ;;  %v3506_v33 = vpop.xlane.xlu0 %446 }
 0x168   : > { %v1241_v22 = vsel %vm1240_vm13, %v1239_v37, 0.0  ;;  %2557 = vrcp.f32 %v3506_v33 }
 0x169   : > { %v1882_v25 = vmin.f32 %v1879_v14, %v1880_v41  ;;  %v1242_v10 = vrot.slane %v1241_v22, 4  ;;  %2559 = vrcp.f32 %v3476_v28 }
 0x16b   : > { %v3493_v11 = vmin.f32 %v1881_v50, %v1882_v25  ;;  %v1040_v62 = vpop.permute.xlu1 %1039  ;;  %v1243_v63 = vadd.f32 %v1242_v10, %v1241_v22  ;;  %v3512_v26 = vpop.xlane.xlu0 %450 }
 0x16c   : > { %v3496_v27 = vmul.f32 %v3106_v47, %v1040_v62  ;;  %v1061_v20 = vmul.f32 %v1040_v62, %v3102_v39  ;;  %2561 = vrcp.f32 %v3512_v26 }
 0x16d   : > { %3870 = vst [vmem:[#allocation21_spill] sm:$0xff] %v3493_v11  ;;  %v1244_v18 = vrot.slane %v1243_v63, 2  ;;  %2563 = vrcp.f32 %v3482_v16 }
 0x16e   : > { %3871 = vst [vmem:[#allocation22_spill] sm:$0xff] %v3496_v27  ;;  %v3502_v51 = vadd.f32 %v3420_v42, %v1061_v20 }
 0x16f   : > { %v1245_v41 = vadd.f32 %v1244_v18, %v1243_v63  ;;  %v3525_v25 = vpop.xlane.xlu0 %454 }
 0x170   : > { %3872 = vst [vmem:[#allocation23_spill] sm:$0xff] %v3502_v51  ;;  %2565 = vrcp.f32 %v3525_v25 }
 0x171   : > { %v1246_v10 = vrot.slane %v1245_v41, 1  ;;  %2567 = vrcp.f32 %v3488_v60 }
 0x172   : > { %v3517_v31 = vpop.eup %2557 }
 0x173   : > { %v3523_v5 = vpop.eup %2559  ;;  %v3541_v18 = vadd.f32 %v1246_v10, %v1245_v41  ;;  %v3543_v30 = vpop.xlane.xlu0 %458 }
 0x174   : > { %2569 = vrcp.f32 %v3543_v30 }
 0x175   : > { %v1248_v41 = vadd.f32 %v3541_v18, %v3289_v34  ;;  %2571 = vrcp.f32 %v3491_v15 }
 0x176   : > { %v3531_v22 = vpop.eup %2561  ;;  %2573 = vlog2.f32 %v3476_v28 }
 0x177   : > { %2575 = vlog2.f32 %v3506_v33 }
 0x178   : > { %2577 = vlog2.f32 %v3512_v26 }
 0x179   : > { %2579 = vlog2.f32 %v3482_v16 }
 0x17a   : > { %2581 = vlog2.f32 %v3525_v25 }
 0x17b   : > { %2583 = vlog2.f32 %v3488_v60 }
 0x17c   : > { %2585 = vlog2.f32 %v3543_v30 }
 0x17d   : > { %2587 = vlog2.f32 %v3491_v15  ;;  %v1262_v15 = vadd.f32 %v3541_v18, %v3485_v46 }
 0x19c   : > { %v3509_v4 = vpop.xlane.xlu1 %494 }
 0x1a0   : > { %v3514_v49 = vpop.xlane.xlu1 %498 }
 0x1a2   : > { %v2275_v42 = vpop.f32.mrb[0].mxu0 }
 0x1a3   : > { %v665_v38 = vpop.f32.mrb[1].mxu0  ;;  %v705_v62 = vmul.f32 %v3523_v5, %v2275_v42  ;;  %v3539_v42 = vpop.eup %2563 }
 0x1a4   : > { %v704_v1 = vmul.f32 %v3517_v31, %v665_v38  ;;  %v3520_v56 = vpop.xlane.xlu1 %500  ;;  %v3549_v32 = vpop.eup %2565 }
 0x1a5   : > { %v3559_v35 = vpop.eup %2567 }
 0x1a6   : > { %v2278_v50 = vpop.f32.mrb[2].mxu0  ;;  %712 = vxpose.xlu0.b32.start [1/8] (short) (narrow) %v704_v1, 8 }
 0x1a7   : > { %v675_v14 = vpop.f32.mrb[3].mxu0 }
 0x1a8   : > { %v3528_v20 = vpop.xlane.xlu1 %502  ;;  %v706_v1 = vmul.f32 %v3531_v22, %v675_v14 }
 0x1aa   : > { %v2281_v37 = vpop.f32.mrb[4].mxu0  ;;  %713 = vxpose.xlu0.b32.cont [2/8] (short) (narrow) %v705_v62, 8  ;;  %v707_v62 = vmul.f32 %v3539_v42, %v2278_v50 }
 0x1ab   : > { %v685_v38 = vpop.f32.mrb[5].mxu0  ;;  %v709_v23 = vmul.f32 %v3559_v35, %v2281_v37  ;;  %v3577_v37 = vpop.eup %2569 }
 0x1ac   : > { %v3534_v61 = vpop.xlane.xlu1 %504  ;;  %v708_v10 = vmul.f32 %v3549_v32, %v685_v38  ;;  %v1251_v38 = vadd.f32 %v3541_v18, %v3345_v44 }
 0x1ae   : > { %v3537_v63 = vpop.f32.mrb[6].mxu0  ;;  %714 = vxpose.xlu0.b32.cont [3/8] (short) (narrow) %v706_v1, 8  ;;  %v1249_v1 = vadd.f32 %v3541_v18, %v3291_v36 }
 0x1af   : > { %v695_v19 = vpop.f32.mrb[7].mxu0 }
 0x1b0   : > { %v3546_v7 = vpop.xlane.xlu1 %506 }
 0x1b2   : > { %v2289_v14 = vpop.f32.mrb[8].mxu0  ;;  %715 = vxpose.xlu0.b32.cont [4/8] (short) (narrow) %v707_v62, 8 }
 0x1b3   : > { %v1462_v0 = vmul.f32 2.0, %v2289_v14  ;;  %v1382_v24 = vpop.f32.mrb[9].mxu0 }
 0x1b4   : > { %v1461_v11 = vmul.f32 2.0, %v1382_v24  ;;  %v3556_v50 = vpop.xlane.xlu1 %508 }
 0x1b5   : > { %v1478_v51 = vsub.f32 %v1249_v1, %v1462_v0  ;;  %v1253_v1 = vadd.f32 %v3541_v18, %v3373_v3 }
 0x1b6   : > { %v2292_v62 = vpop.f32.mrb[10].mxu0  ;;  %716 = vxpose.xlu0.b32.cont [5/8] (short) (narrow) %v708_v10, 8  ;;  %v1477_v27 = vsub.f32 %v1248_v41, %v1461_v11 }
 0x1b7   : > { %v1464_v43 = vmul.f32 2.0, %v2292_v62  ;;  %v1392_v14 = vpop.f32.mrb[11].mxu0  ;;  %v3562_v45 = vsel %vm1139_vm14, %v1478_v51, inf }
 0x1b8   : > { %1497 = vmin.xlane.f32.xlu1 %v3562_v45  ;;  %v1045_v24 = vpop.permute.xlu1 %1044  ;;  %v1463_v41 = vmul.f32 2.0, %v1392_v14  ;;  %v3575_v51 = vsel %vm1139_vm14, %v1477_v27, inf  ;;  %v710_v14 = vmul.f32 %v3577_v37, %v695_v19  ;;  %v1250_v27 = vadd.f32 %v3541_v18, %v3320_v55 }
 0x1b9   : > { %v3569_v0 = vmul.f32 %v3106_v47, %v1045_v24  ;;  %v1062_v11 = vmul.f32 %v1045_v24, %v3102_v39  ;;  %v1480_v39 = vsub.f32 %v1251_v38, %v1464_v43  ;;  %v1252_v24 = vadd.f32 %v3541_v18, %v3363_v12 }
 0x1ba   : > { %v2295_v10 = vpop.f32.mrb[12].mxu0  ;;  %717 = vxpose.xlu0.b32.cont [6/8] (short) (narrow) %v709_v23, 8  ;;  %v1255_v43 = vadd.f32 %v3541_v18, %v3386_v17  ;;  %v1479_v28 = vsub.f32 %v1250_v27, %v1463_v41 }
 0x1bb   : > { %3873 = vst [vmem:[#allocation24_spill] sm:$0xff] %v3569_v0  ;;  %v3582_v58 = vadd.f32 %v3427_v21, %v1062_v11  ;;  %v1466_v47 = vmul.f32 2.0, %v2295_v10  ;;  %v1402_v8 = vpop.f32.mrb[13].mxu0  ;;  %v1254_v21 = vadd.f32 %v3541_v18, %v3380_v9 }
 0x1bc   : > { %v1465_v23 = vmul.f32 2.0, %v1402_v8  ;;  %1494 = vmin.xlane.f32.xlu1 %v3575_v51  ;;  %v3596_v8 = vpop.eup %2571 }
 0x1bd   : > { %3874 = vst [vmem:[#allocation25_spill] sm:$0xff] %v3582_v58  ;;  %v1482_v62 = vsub.f32 %v1253_v1, %v1466_v47  ;;  %v3599_v58 = vsel %vm1139_vm14, %v1480_v39, inf  ;;  %v711_v47 = vmul.f32 %v3596_v8, %v3537_v63  ;;  %v1257_v39 = vadd.f32 %v3541_v18, %v3457_v40 }
 0x1be   : > { %v2298_v38 = vpop.f32.mrb[14].mxu0  ;;  %718 = vxpose.xlu0.b32.cont [7/8] (short) (narrow) %v710_v14, 8  ;;  %v1481_v19 = vsub.f32 %v1252_v24, %v1465_v23 }
 0x1bf   : > { %v1468_v11 = vmul.f32 2.0, %v2298_v38  ;;  %v1412_v10 = vpop.f32.mrb[15].mxu0  ;;  %v1508_v1 = vsel %vm1139_vm14, %v1482_v62, inf  ;;  %v1499_v38 = vsel %vm1139_vm14, %v1479_v28, inf  ;;  %v1259_v28 = vadd.f32 %v3541_v18, %v3465_v48 }
 0x1c0   : > { %v1467_v0 = vmul.f32 2.0, %v1412_v10  ;;  %1503 = vmin.xlane.f32.xlu1 %v3599_v58  ;;  %v1582_v33 = vmin.f32 %v3562_v45, %v1508_v1  ;;  %v1505_v24 = vsel %vm1139_vm14, %v1481_v19, inf  ;;  %v2574_v10 = vpop.eup %2573 }
 0x1c1   : > { %v1581_v14 = vmin.f32 %v3575_v51, %v1505_v24  ;;  %v1484_v23 = vsub.f32 %v1255_v43, %v1468_v11  ;;  %v1256_v51 = vadd.f32 %v3541_v18, %v3393_v52 }
 0x1c2   : > { %v2301_v41 = vpop.f32.mrb[16].mxu0  ;;  %719 = vxpose.xlu0.b32.end [8/8] (short) (narrow) %v711_v47, 8  ;;  %v1483_v62 = vsub.f32 %v1254_v21, %v1467_v0  ;;  %v497_v47 = vpop.xlane.xlu0 %496 }
 0x1c3   : > { %v1470_v63 = vmul.f32 2.0, %v2301_v41  ;;  %v1422_v27 = vpop.f32.mrb[17].mxu0  ;;  %v3614_v45 = vsel %vm1139_vm14, %v1484_v23, inf }
 0x1c4   : > { %v1469_v43 = vmul.f32 2.0, %v1422_v27  ;;  %1500 = vmin.xlane.f32.xlu1 %v1499_v38  ;;  %v1511_v19 = vsel %vm1139_vm14, %v1483_v62, inf  ;;  %v1584_v26 = vmin.f32 %v3599_v58, %v3614_v45  ;;  %v2576_v27 = vpop.eup %2575  ;;  %v1258_v58 = vadd.f32 %v3541_v18, %v3459_v6 }
 0x1c5   : > { %v1583_v16 = vmin.f32 %v1499_v38, %v1511_v19  ;;  %v1486_v0 = vsub.f32 %v1257_v39, %v1470_v63  ;;  %v1260_v38 = vadd.f32 %v3541_v18, %v3471_v2  ;;  %v2578_v30 = vpop.eup %2577 }
 0x1c6   : > { %v2304_v21 = vpop.f32.mrb[18].mxu0  ;;  %v1485_v11 = vsub.f32 %v1256_v51, %v1469_v43  ;;  %v473_v43 = vmul.f32 0.6931472, %v2574_v10  ;;  %v1263_v10 = vadd.f32 %v3541_v18, %v3400_v29 }
 0x1c7   : > { %v1472_v23 = vmul.f32 2.0, %v2304_v21  ;;  %v1432_v41 = vpop.f32.mrb[19].mxu0  ;;  %v1520_v62 = vsel %vm1139_vm14, %v1486_v0, inf  ;;  %v511_v0 = vmul.f32 %v3523_v5, %v497_v47  ;;  %v510_v21 = vmul.f32 %v3517_v31, %v3509_v4  ;;  %v2580_v31 = vpop.eup %2579 }
 0x1c8   : > { %v1471_v25 = vmul.f32 2.0, %v1432_v41  ;;  %1509 = vmin.xlane.f32.xlu1 %v1508_v1  ;;  %v1586_v39 = vmin.f32 %v1582_v33, %v1520_v62  ;;  %v3629_v63 = vsel %vm1139_vm14, %v1485_v11, inf  ;;  %v1261_v33 = vadd.f32 %v3541_v18, %v3479_v54 }
 0x1c9   : > { %v1585_v60 = vmin.f32 %v1581_v14, %v3629_v63  ;;  %v1488_v51 = vsub.f32 %v1259_v28, %v1472_v23  ;;  %v471_v11 = vmul.f32 0.6931472, %v2576_v27  ;;  %v512_v28 = vmul.f32 %v3531_v22, %v3514_v49 }
 0x1ca   : > { %v2307_v41 = vpop.f32.mrb[20].mxu0  ;;  %v1487_v1 = vsub.f32 %v1258_v58, %v1471_v25  ;;  %v2582_v25 = vpop.eup %2581  ;;  %v477_v49 = vmul.f32 0.6931472, %v2580_v31 }
 0x1cb   : > { %v1474_v57 = vmul.f32 2.0, %v2307_v41  ;;  %v1442_v53 = vpop.f32.mrb[21].mxu0  ;;  %v3641_v2 = vsel %vm1139_vm14, %v1488_v51, inf  ;;  %v475_v51 = vmul.f32 0.6931472, %v2578_v30  ;;  %v2584_v18 = vpop.eup %2583 }
 0x1cc   : > { %v1473_v14 = vmul.f32 2.0, %v1442_v53  ;;  %1506 = vmin.xlane.f32.xlu1 %v1505_v24  ;;  %v3645_v5 = vsel %vm1139_vm14, %v1487_v1, inf  ;;  %v1588_v4 = vmin.f32 %v1584_v26, %v3641_v2  ;;  %v519_v53 = vsub.f32 %v473_v43, %v511_v0 }
 0x1cd   : > { %v1587_v47 = vmin.f32 %v1583_v16, %v3645_v5  ;;  %v1490_v23 = vsub.f32 %v1261_v33, %v1474_v57  ;;  %v518_v24 = vsub.f32 %v471_v11, %v510_v21  ;;  %v513_v26 = vmul.f32 %v3539_v42, %v3520_v56  ;;  %v2586_v11 = vpop.eup %2585 }
 0x1ce   : > { %v2310_v27 = vpop.f32.mrb[22].mxu0  ;;  %v1489_v58 = vsub.f32 %v1260_v38, %v1473_v14  ;;  %v520_v43 = vsub.f32 %v475_v51, %v512_v28  ;;  %v514_v38 = vmul.f32 %v3549_v32, %v3528_v20  ;;  %v479_v56 = vmul.f32 0.6931472, %v2582_v25 }
 0x1cf   : > { %v1476_v41 = vmul.f32 2.0, %v2310_v27  ;;  %v1452_v1 = vpop.f32.mrb[23].mxu0  ;;  %v1532_v29 = vsel %vm1139_vm14, %v1490_v23, inf  ;;  %v527_v33 = vsel %vm526_vm5, %v518_v24, 0.0  ;;  %v521_v30 = vsub.f32 %v477_v49, %v513_v26  ;;  %v2588_v24 = vpop.eup %2587 }
 0x1d0   : > { %v1475_v22 = vmul.f32 2.0, %v1452_v1  ;;  %1512 = vmin.xlane.f32.xlu1 %v1511_v19  ;;  %v1590_v57 = vmin.f32 %v1586_v39, %v1532_v29  ;;  %v1529_v16 = vsel %vm1139_vm14, %v1489_v58, inf  ;;  %v515_v14 = vmul.f32 %v3559_v35, %v3534_v61 }
 0x1d1   : > { %v1589_v0 = vmin.f32 %v1585_v60, %v1529_v16  ;;  %v1492_v21 = vsub.f32 %v1263_v10, %v1476_v41  ;;  %v528_v31 = vsel %vm526_vm5, %v519_v53, 0.0  ;;  %v481_v28 = vmul.f32 0.6931472, %v2584_v18 }
 0x1d2   : > { %v1491_v42 = vsub.f32 %v1262_v15, %v1475_v22  ;;  %v530_v60 = vsel %vm526_vm5, %v520_v43, 0.0  ;;  %v522_v10 = vsub.f32 %v479_v56, %v514_v38  ;;  %v516_v23 = vmul.f32 %v3577_v37, %v3546_v7 }
 0x1d3   : > { %v1593_v19 = vmin.f32 %v1589_v0, %v1590_v57  ;;  %v1538_v39 = vsel %vm1139_vm14, %v1492_v21, inf  ;;  %v529_v27 = vadd.f32 %v528_v31, %v527_v33  ;;  %v483_v35 = vmul.f32 0.6931472, %v2586_v11 }
 0x1d4   : > { %1521 = vmin.xlane.f32.xlu1 %v1520_v62  ;;  %v1535_v32 = vsel %vm1139_vm14, %v1491_v42, inf  ;;  %v1592_v20 = vmin.f32 %v1588_v4, %v1538_v39  ;;  %v532_v61 = vsel %vm526_vm5, %v521_v30, 0.0  ;;  %v523_v58 = vsub.f32 %v481_v28, %v515_v14  ;;  %v2102_v42 = vld [vmem:[%s393_s22] ss:$0 sm:$0xff]  ;;  %s371_s22 = scalar_lea.vmem [#allocation4], %s370_s25 }
 0x1d5   : > { %v1591_v15 = vmin.f32 %v1587_v47, %v1535_v32  ;;  %v517_v53 = vmul.f32 %v3596_v8, %v3556_v50  ;;  %v531_v25 = vadd.f32 %v530_v60, %v529_v27  ;;  %v534_v4 = vsel %vm526_vm5, %v522_v10, 0.0  ;;  %v3878_v60 = vld [vmem:[#allocation20_spill] sm:$0xff] }
 0x1d6   : > { %v524_v51 = vsub.f32 %v483_v35, %v516_v23  ;;  %v485_v26 = vmul.f32 0.6931472, %v2588_v24  ;;  %v536_v37 = vsel %vm526_vm5, %v523_v58, 0.0  ;;  %v3875_v57 = vmov 0   ;;  %v3880_v24 = vld [vmem:[#allocation18_spill] sm:$0xff]  ;;  %v3882_v35 = vld [vmem:[#allocation19_spill] sm:$0xff] }
 0x1d7   : > { %v1594_v62 = vmin.f32 %v1591_v15, %v1592_v20  ;;  %v533_v7 = vadd.f32 %v532_v61, %v531_v25  ;;  %v1902_v18 = vsel %vm526_vm5, %v3291_v36, 0.0  ;;  %v1912_v36 = vsel %vm526_vm5, %v3380_v9, 0.0  ;;  %v3879_v15 = vld [vmem:[#allocation13_spill] sm:$0xff]  ;;  %v3883_v58 = vld [vmem:[#allocation12_spill] sm:$0xff] }
 0x1d8   : > { %1518 = vmin.xlane.f32.xlu1 %v3629_v63  ;;  %v525_v47 = vsub.f32 %v485_v26, %v517_v53  ;;  %v538_v49 = vsel %vm526_vm5, %v524_v51, 0.0  ;;  %v1920_v9 = vsel %vm526_vm5, %v3459_v6, 0.0  ;;  %v1922_v14 = vsel %vm526_vm5, %v3465_v48, 0.0  ;;  %v3884_v53 = vld [vmem:[#allocation16_spill] sm:$0xff]  ;;  %v3887_v51 = vld [vmem:[#allocation15_spill] sm:$0xff] }
 0x1d9   : > { %v1595_v41 = vmin.f32 %v1593_v19, %v1594_v62  ;;  %v535_v1 = vadd.f32 %v534_v4, %v533_v7  ;;  %v2589_v19 = vld [vmem:[%s3079_s11] sm:$0x7]  ;;  %v3877_v28 = vsub.s32 2, %v3085_v59  ;;  %v1924_v6 = vsel %vm526_vm5, %v3878_v60, 0.0  ;;  %v3888_v26 = vld [vmem:[#allocation24_spill] sm:$0xff] }
 0x1da   : > { %v540_v50 = vsel %vm526_vm5, %v525_v47, 0.0  ;;  %v3881_v27 = vsub.f32 %v3879_v15, %v3880_v24  ;;  %v3885_v62 = vsub.f32 %v3883_v58, %v3884_v53  ;;  %v3886_v4 = vld [vmem:[#allocation17_spill] sm:$0xff]  ;;  %v3889_v7 = vsub.f32 %v3887_v51, %v3888_v26 }
 0x1db   : > { %v537_v22 = vadd.f32 %v536_v37, %v535_v1  ;;  %v1596_v30 = vrot.slane %v1595_v41, 4  ;;  %v3890_v47 = vld [vmem:[#allocation25_spill] sm:$0xff]  ;;  %v3891_v1 = vld [vmem:[#allocation14_spill] sm:$0xff]  ;;  %v1926_v51 = vsel %vm526_vm5, %v3479_v54, 0.0 }
 0x1dc   : > { %1527 = vmin.xlane.f32.xlu1 %v3641_v2  ;;  %v1901_v2 = vsel %vm526_vm5, %v3289_v34, 0.0  ;;  %v1910_v34 = vsel %vm526_vm5, %v3373_v3, 0.0 }
 0x1dd   : > { %v539_v8 = vadd.f32 %v538_v49, %v537_v22  ;;  %v1597_v10 = vmin.f32 %v1595_v41, %v1596_v30  ;;  %v3892_v49 = vld [vmem:[#allocation22_spill] sm:$0xff] }
 0x1de   : > { %v3893_v22 = vsub.f32 %v3891_v1, %v3892_v49  ;;  %v1928_v49 = vsel %vm526_vm5, %v3485_v46, 0.0 }
 0x1df   : > { %v541_v63 = vadd.f32 %v540_v50, %v539_v8 }
 0x1e0   : > { %1524 = vmin.xlane.f32.xlu1 %v3645_v5  ;;  %v1903_v5 = vadd.f32 %v1902_v18, %v1901_v2 }
 0x1e4   : > { %542 = vadd.xlane.f32.xlu1 %v541_v63 }
 0x1e8   : > { %1533 = vmin.xlane.f32.xlu1 %v1532_v29  ;;  %v1904_v29 = vsel %vm526_vm5, %v3320_v55, 0.0  ;;  %v1914_v55 = vsel %vm526_vm5, %v3386_v17, 0.0 }
 0x1e9   : > { %v1905_v43 = vadd.f32 %v1904_v29, %v1903_v5  ;;  %v3894_v29 = vld [vmem:[#allocation23_spill] sm:$0xff] }
 0x1eb   : > { %2508 = vset.pattern.permute.xlu0 %v3875_v57 }
 0x1ef   : > { %1515 = vmin.xlane.f32.xlu0 %v3614_v45  ;;  %v1906_v45 = vsel %vm526_vm5, %v3345_v44, 0.0  ;;  %v1916_v44 = vsel %vm526_vm5, %v3393_v52, 0.0 }
 0x1f0   : > { %v1907_v38 = vadd.f32 %v1906_v45, %v1905_v43 }
 0x1f3   : > { %952 = vadd.xlane.f32.xlu0 %v3429_v13  ;;  %v1908_v13 = vsel %vm526_vm5, %v3363_v12, 0.0  ;;  %v1918_v12 = vsel %vm526_vm5, %v3457_v40, 0.0  ;;  %v3876_v40 = vsub.s32 0, %v3085_v59 }
 0x1f7   : > { %1530 = vmin.xlane.f32.xlu0 %v1529_v16  ;;  %v1909_v16 = vadd.f32 %v1908_v13, %v1907_v38 }
 0x1f9   : > { %v1911_v0 = vadd.f32 %v1910_v34, %v1909_v16  ;;  %v1598_v16 = vrot.slane %v1597_v10, 2 }
 0x1fb   : > { %1536 = vmin.xlane.f32.xlu0 %v1535_v32  ;;  %v1913_v21 = vadd.f32 %v1912_v36, %v1911_v0 }
 0x1fd   : > { %v1915_v33 = vadd.f32 %v1914_v55, %v1913_v21 }
 0x1ff   : > { %1539 = vmin.xlane.f32.xlu0 %v1538_v39  ;;  %v1917_v56 = vadd.f32 %v1916_v44, %v1915_v33 }
 0x201   : > { %v1919_v3 = vadd.f32 %v1918_v12, %v1917_v56 }
 0x203   : > { %v1921_v11 = vadd.f32 %v1920_v9, %v1919_v3 }
 0x205   : > { %v1923_v20 = vadd.f32 %v1922_v14, %v1921_v11 }
 0x226   : > { %v728_v17 = vpop.trf.xlu0 }
 0x227   : > { %v968_v52 = vmul.f32 %v2102_v42, %v728_v17 }
 0x229   : > { %v970_v39 = vsub.f32 %v2589_v19, %v968_v52  ;;  %v1074_v31 = vrot.slane %v968_v52, %v3876_v40  ;;  %v1106_v32 = vrot.slane %v968_v52, %v3877_v28  ;;  %v1599_v40 = vmin.f32 %v1597_v10, %v1598_v16 }
 0x22b   : > { %v971_v23 = vand.u32 2147483647, %v970_v39  ;;  %v1076_v48 = vsub.f32 %v3881_v27, %v1074_v31  ;;  %v1108_v61 = vsub.f32 %v3882_v35, %v1106_v32  ;;  %v1075_v25 = vsub.f32 %v3885_v62, %v1074_v31 }
 0x22c   : > { %v1107_v59 = vsub.f32 %v3886_v4, %v1106_v32  ;;  %v1078_v37 = vsub.f32 %v3889_v7, %v1074_v31  ;;  %v1110_v41 = vsub.f32 %v3890_v47, %v1106_v32  ;;  %v1077_v50 = vsub.f32 %v3893_v22, %v1074_v31 }
 0x22d   : > { %v972_v8 = vmul.f32 %v971_v23, %v971_v23  ;;  %v2103_v63 = vadd.f32 -0.05, %v971_v23  ;;  %vm975_vm1 = vcmp.gt.f32.partialorder %v971_v23, 0.1  ;;  %v1080_v57 = vand.u32 2147483647, %v1076_v48 }
 0x22e   : > { %v1112_v2 = vand.u32 2147483647, %v1108_v61  ;;  %v1079_v18 = vand.u32 2147483647, %v1075_v25  ;;  %v1111_v5 = vand.u32 2147483647, %v1107_v59  ;;  %v1109_v43 = vsub.f32 %v3894_v29, %v1106_v32 }
 0x22f   : > { %v973_v45 = vmul.f32 5.0, %v972_v8  ;;  %v1084_v38 = vmul.f32 %v1080_v57, %v1080_v57  ;;  %v2105_v13 = vadd.f32 -0.05, %v1080_v57  ;;  %vm1096_vm4 = vcmp.gt.f32.partialorder %v1080_v57, 0.1 }
 0x230   : > { %v1116_v34 = vmul.f32 %v1112_v2, %v1112_v2  ;;  %v2109_v0 = vadd.f32 -0.05, %v1112_v2  ;;  %v1083_v36 = vmul.f32 %v1079_v18, %v1079_v18  ;;  %vm1128_vm6 = vcmp.gt.f32.partialorder %v1112_v2, 0.1  ;;  %v3895_v2 = vld [vmem:[#allocation11_spill] sm:$0xff] }
 0x231   : > { %v976_v21 = vsel %vm975_vm1, %v2103_v63, %v973_v45  ;;  %v1088_v55 = vmul.f32 5.0, %v1084_v38  ;;  %v2104_v33 = vadd.f32 -0.05, %v1079_v18  ;;  %v1115_v3 = vmul.f32 %v1111_v5, %v1111_v5 }
 0x232   : > { %v978_v44 = vrot.slane %v976_v21, 1  ;;  %v1120_v56 = vmul.f32 5.0, %v1116_v34  ;;  %v1087_v12 = vmul.f32 5.0, %v1083_v36  ;;  %vm1095_vm7 = vcmp.gt.f32.partialorder %v1079_v18, 0.1 }
 0x233   : > { %v1100_v9 = vsel %vm1096_vm4, %v2105_v13, %v1088_v55  ;;  %v2108_v42 = vadd.f32 -0.05, %v1111_v5  ;;  %v1082_v11 = vand.u32 2147483647, %v1078_v37  ;;  %v1119_v52 = vmul.f32 5.0, %v1115_v3 }
 0x234   : > { %v981_v30 = vsel %vm980_vm15, %v978_v44, 0.0  ;;  %v1132_v17 = vsel %vm1128_vm6, %v2109_v0, %v1120_v56  ;;  %v1099_v14 = vsel %vm1095_vm7, %v2104_v33, %v1087_v12  ;;  %vm1127_vm8 = vcmp.gt.f32.partialorder %v1111_v5, 0.1 }
 0x235   : > { %982 = vadd.xlane.f32.xlu1 %v981_v30  ;;  %v1136_v19 = vadd.f32 %v1132_v17, %v1100_v9  ;;  %v1086_v39 = vmul.f32 %v1082_v11, %v1082_v11  ;;  %v1131_v31 = vsel %vm1127_vm8, %v2108_v42, %v1119_v52  ;;  %v1114_v28 = vand.u32 2147483647, %v1110_v41 }
 0x236   : > { %v1081_v32 = vand.u32 2147483647, %v1077_v50  ;;  %v1113_v60 = vand.u32 2147483647, %v1109_v43  ;;  %v1135_v15 = vadd.f32 %v1131_v31, %v1099_v14  ;;  %v2107_v27 = vadd.f32 -0.05, %v1082_v11 }
 0x237   : > { %v1143_v23 = vsel %vm1139_vm14, %v1136_v19, 0.0  ;;  %v1090_v24 = vmul.f32 5.0, %v1086_v39  ;;  %vm1098_vm9 = vcmp.gt.f32.partialorder %v1082_v11, 0.1  ;;  %v1118_v48 = vmul.f32 %v1114_v28, %v1114_v28 }
 0x238   : > { %1144 = vadd.xlane.f32.xlu0 %v1143_v23  ;;  %v1085_v35 = vmul.f32 %v1081_v32, %v1081_v32  ;;  %v1925_v61 = vadd.f32 %v1924_v6, %v1923_v20  ;;  %v1140_v58 = vsel %vm1139_vm14, %v1135_v15, 0.0  ;;  %v2111_v62 = vadd.f32 -0.05, %v1114_v28 }
 0x239   : > { %v1102_v53 = vsel %vm1098_vm9, %v2107_v27, %v1090_v24  ;;  %1141 = vadd.xlane.f32.xlu1 %v1140_v58  ;;  %v1122_v10 = vmul.f32 5.0, %v1118_v48  ;;  %v2106_v4 = vadd.f32 -0.05, %v1081_v32  ;;  %v1117_v59 = vmul.f32 %v1113_v60, %v1113_v60 }
 0x23a   : > { %v1089_v25 = vmul.f32 5.0, %v1085_v35  ;;  %vm1130_vm0 = vcmp.gt.f32.partialorder %v1114_v28, 0.1  ;;  %vm1097_vm10 = vcmp.gt.f32.partialorder %v1081_v32, 0.1  ;;  %v1600_v26 = vrot.slane %v1599_v40, 1 }
 0x23b   : > { %v1134_v7 = vsel %vm1130_vm0, %v2111_v62, %v1122_v10  ;;  %v1121_v47 = vmul.f32 5.0, %v1117_v59  ;;  %v2110_v41 = vadd.f32 -0.05, %v1113_v60  ;;  %vm1129_vm11 = vcmp.gt.f32.partialorder %v1113_v60, 0.1  ;;  %v3896_v32 = vld [vmem:[#allocation21_spill] sm:$0xff] }
 0x23c   : > { %v1101_v37 = vsel %vm1097_vm10, %v2106_v4, %v1089_v25  ;;  %v1138_v20 = vadd.f32 %v1134_v7, %v1102_v53  ;;  %v1927_v6 = vadd.f32 %v1926_v51, %v1925_v61  ;;  %v1601_v8 = vmin.f32 %v1599_v40, %v1600_v26 }
 0x23d   : > { %v1133_v1 = vsel %vm1129_vm11, %v2110_v41, %v1121_v47  ;;  %v1930_v18 = vsel %vm526_vm5, %v3895_v2, 0.0  ;;  %v1884_v60 = vrot.slane %v3896_v32, 4 }
 0x23e   : > { %v1149_v22 = vsel %vm1139_vm14, %v1138_v20, 0.0  ;;  %v1137_v50 = vadd.f32 %v1133_v1, %v1101_v37  ;;  %v1929_v63 = vadd.f32 %v1928_v49, %v1927_v6  ;;  %v1602_v57 = vsel %vm980_vm15, %v1601_v8, 0.0 }
 0x23f   : > { %1150 = vadd.xlane.f32.xlu0 %v1149_v22  ;;  %v1885_v61 = vmin.f32 %v3896_v32, %v1884_v60 }
 0x240   : > { %v1146_v54 = vsel %vm1139_vm14, %v1137_v50, 0.0  ;;  %v1931_v29 = vadd.f32 %v1930_v18, %v1929_v63 }
 0x241   : > { %1147 = vadd.xlane.f32.xlu1 %v1146_v54  ;;  %v1886_v51 = vrot.slane %v1885_v61, 2 }
 0x243   : > { %1603 = vadd.xlane.f32.xlu0 %v1602_v57  ;;  %v1887_v49 = vmin.f32 %v1885_v61, %v1886_v51 }
 0x245   : > { %v1498_v5 = vpop.xlane.xlu1 %1497  ;;  %v1888_v18 = vrot.slane %v1887_v49, 1 }
 0x246   : > { %v1542_v55 = vsel %vm526_vm5, %v1498_v5, 0.0 }
 0x247   : > { %1932 = vadd.xlane.f32.xlu0 %v1931_v29 }
 0x249   : > { %v1495_v43 = vpop.xlane.xlu1 %1494 }
 0x24a   : > { %v1541_v36 = vsel %vm526_vm5, %v1495_v43, 0.0 }
 0x24b   : > { %v1543_v44 = vadd.f32 %v1542_v55, %v1541_v36 }
 0x24d   : > { %v1504_v46 = vpop.xlane.xlu1 %1503 }
 0x24e   : > { %v1546_v3 = vsel %vm526_vm5, %v1504_v46, 0.0 }
 0x251   : > { %v1501_v45 = vpop.xlane.xlu1 %1500 }
 0x252   : > { %v1544_v33 = vsel %vm526_vm5, %v1501_v45, 0.0  ;;  %v1889_v45 = vmin.f32 %v1887_v49, %v1888_v18 }
 0x253   : > { %v1545_v12 = vadd.f32 %v1544_v33, %v1543_v44 }
 0x255   : > { %v1510_v38 = vpop.xlane.xlu1 %1509  ;;  %v1547_v11 = vadd.f32 %v1546_v3, %v1545_v12 }
 0x256   : > { %v1550_v19 = vsel %vm526_vm5, %v1510_v38, 0.0  ;;  %v1891_v38 = vsel %vm1890_vm12, %v1889_v45, 0.0 }
 0x259   : > { %v1507_v13 = vpop.xlane.xlu1 %1506 }
 0x25a   : > { %v1548_v9 = vsel %vm526_vm5, %v1507_v13, 0.0 }
 0x25b   : > { %v1549_v17 = vadd.f32 %v1548_v9, %v1547_v11 }
 0x25d   : > { %v1513_v16 = vpop.xlane.xlu1 %1512  ;;  %v1551_v39 = vadd.f32 %v1550_v19, %v1549_v17 }
 0x25e   : > { %v1552_v31 = vsel %vm526_vm5, %v1513_v16, 0.0 }
 0x25f   : > { %v1553_v23 = vadd.f32 %v1552_v31, %v1551_v39 }
 0x261   : > { %v1522_v34 = vpop.xlane.xlu1 %1521 }
 0x262   : > { %v1558_v62 = vsel %vm526_vm5, %v1522_v34, 0.0 }
 0x265   : > { %v1519_v0 = vpop.xlane.xlu1 %1518 }
 0x266   : > { %v1556_v35 = vsel %vm526_vm5, %v1519_v0, 0.0 }
 0x269   : > { %v1528_v21 = vpop.xlane.xlu1 %1527 }
 0x26a   : > { %v1562_v37 = vsel %vm526_vm5, %v1528_v21, 0.0 }
 0x26d   : > { %v1525_v56 = vpop.xlane.xlu1 %1524 }
 0x26e   : > { %v1560_v4 = vsel %vm526_vm5, %v1525_v56, 0.0 }
 0x271   : > { %v543_v42 = vpop.xlane.xlu1 %542 }
 0x272   : > { %v544_v30 = vrot.slane %v543_v42, 4 }
 0x274   : > { %v545_v14 = vadd.f32 %v544_v30, %v543_v42 }
 0x275   : > { %v1534_v41 = vpop.xlane.xlu1 %1533 }
 0x276   : > { %v546_v52 = vrot.slane %v545_v14, 2  ;;  %v1566_v8 = vsel %vm526_vm5, %v1534_v41, 0.0 }
 0x278   : > { %v547_v40 = vadd.f32 %v546_v52, %v545_v14 }
 0x27a   : > { %v548_v28 = vrot.slane %v547_v40, 1 }
 0x27c   : > { %v1516_v15 = vpop.xlane.xlu0 %1515  ;;  %v549_v24 = vadd.f32 %v548_v28, %v547_v40 }
 0x27d   : > { %v1554_v27 = vsel %vm526_vm5, %v1516_v15, 0.0 }
 0x27e   : > { %v1555_v48 = vadd.f32 %v1554_v27, %v1553_v23  ;;  %2447 = vpush %v549_v24 }
 0x280   : > { %v1557_v58 = vadd.f32 %v1556_v35, %v1555_v48  ;;  %v953_v53 = vpop.xlane.xlu0 %952 }
 0x281   : > { %v954_v10 = vrot.slane %v953_v53, 4 }
 0x282   : > { %v1559_v25 = vadd.f32 %v1558_v62, %v1557_v58 }
 0x283   : > { %v955_v59 = vadd.f32 %v954_v10, %v953_v53 }
 0x284   : > { %v1561_v26 = vadd.f32 %v1560_v4, %v1559_v25  ;;  %v1531_v7 = vpop.xlane.xlu0 %1530 }
 0x285   : > { %v956_v47 = vrot.slane %v955_v59, 2  ;;  %v1564_v6 = vsel %vm526_vm5, %v1531_v7, 0.0 }
 0x286   : > { %v1563_v20 = vadd.f32 %v1562_v37, %v1561_v26 }
 0x287   : > { %v957_v1 = vadd.f32 %v956_v47, %v955_v59 }
 0x288   : > { %v1565_v22 = vadd.f32 %v1564_v6, %v1563_v20  ;;  %v1537_v50 = vpop.xlane.xlu0 %1536 }
 0x289   : > { %v958_v54 = vrot.slane %v957_v1, 1  ;;  %v1568_v57 = vsel %vm526_vm5, %v1537_v50, 0.0 }
 0x28a   : > { %v1567_v63 = vadd.f32 %v1566_v8, %v1565_v22 }
 0x28b   : > { %v959_v2 = vadd.f32 %v958_v54, %v957_v1 }
 0x28c   : > { %v1569_v5 = vadd.f32 %v1568_v57, %v1567_v63  ;;  %v1540_v29 = vpop.xlane.xlu0 %1539  ;;  %v3897_v63 = vld [vmem:[#allocation10_spill] sm:$0xff] }
 0x28d   : > { %v1570_v43 = vsel %vm526_vm5, %v1540_v29, 0.0  ;;  %2449 = vpush %v959_v2  ;;  %vm1944_vm5 = vcmp.eq.s32.totalorder %v3897_v63, 1  ;;  %vm1951_vm13 = vcmp.eq.s32.totalorder %v3897_v63, 3  ;;  %vm1955_vm14 = vcmp.eq.s32.totalorder %v3897_v63, 4 }
 0x28e   : > { %v1571_v46 = vadd.f32 %v1570_v43, %v1569_v5 }
 0x290   : > { %1572 = vadd.xlane.f32.xlu1 %v1571_v46 }
 0x294   : > { %1892 = vadd.xlane.f32.xlu1 %v1891_v38 }
 0x2af   : > { %s3764_s28 = spop %2447 }
 0x2b0   : > { %v1945_v57 = vstv %s3764_s28  ;;  %s1978_s28 = sshll.u32 %s371_s22, 4  ;;  %s3786_s28 = int_to_ptr.vmem [resolvable:$true] %s1978_s28 }
 0x2b1   : > { %v1946_v18 = vsel %vm1944_vm5, %v1945_v57, 0.0 }
 0x2be   : > { %s3766_s11 = spop %2449 }
 0x2bf   : > { %v1956_v45 = vstv %s3766_s11 }
 0x2c2   : > { %v983_v13 = vpop.xlane.xlu1 %982 }
 0x2c3   : > { %v984_v16 = vrot.slane %v983_v13, 4 }
 0x2c5   : > { %v985_v34 = vadd.f32 %v984_v16, %v983_v13  ;;  %v1145_v33 = vpop.xlane.xlu0 %1144 }
 0x2c6   : > { %v1142_v44 = vpop.xlane.xlu1 %1141 }
 0x2c7   : > { %v986_v0 = vrot.slane %v985_v34, 2 }
 0x2c9   : > { %v987_v36 = vadd.f32 %v986_v0, %v985_v34  ;;  %v1957_v34 = vsel %vm1955_vm14, %v1956_v45, 0.0 }
 0x2cb   : > { %v988_v21 = vrot.slane %v987_v36, 1 }
 0x2cc   : > { %v1151_v56 = vpop.xlane.xlu0 %1150 }
 0x2cd   : > { %v989_v55 = vadd.f32 %v988_v21, %v987_v36 }
 0x2ce   : > { %v1148_v12 = vpop.xlane.xlu1 %1147 }
 0x2cf   : > { %2451 = vpush %v989_v55 }
 0x2d0   : > { %v1604_v28 = vpop.xlane.xlu0 %1603 }
 0x2d1   : > { %v1605_v23 = vrot.slane %v1604_v28, 4 }
 0x2d3   : > { %v1606_v24 = vadd.f32 %v1605_v23, %v1604_v28 }
 0x2d4   : > { %v1933_v15 = vpop.xlane.xlu0 %1932 }
 0x2d5   : > { %v1934_v27 = vrot.slane %v1933_v15, 4  ;;  %v1607_v48 = vrot.slane %v1606_v24, 2 }
 0x2d7   : > { %v1935_v35 = vadd.f32 %v1934_v27, %v1933_v15  ;;  %v1608_v25 = vadd.f32 %v1607_v48, %v1606_v24 }
 0x2d9   : > { %v1936_v62 = vrot.slane %v1935_v35, 2  ;;  %v1609_v37 = vrot.slane %v1608_v25, 1 }
 0x2db   : > { %v1937_v7 = vadd.f32 %v1936_v62, %v1935_v35  ;;  %v1610_v1 = vadd.f32 %v1609_v37, %v1608_v25 }
 0x2dd   : > { %v1938_v49 = vrot.slane %v1937_v7, 1 }
 0x2df   : > { %v1939_v8 = vadd.f32 %v1938_v49, %v1937_v7 }
 0x300   : > { %s2452_s29 = spop %2451 }
 0x301   : > { %v1152_v3 = vstv %s2452_s29 }
 0x302   : > { %v1154_v9 = vadd.f32 %v1152_v3, %v1145_v33  ;;  %v1155_v42 = vadd.f32 %v1152_v3, %v1148_v12  ;;  %v1156_v11 = vadd.f32 %v1152_v3, %v1151_v56  ;;  %v1153_v30 = vadd.f32 %v1152_v3, %v1142_v44 }
 0x304   : > { %v1160_v17 = vmin.f32 %v1155_v42, %v1156_v11  ;;  %2453 = vpush %v1153_v30  ;;  %v1159_v14 = vmin.f32 %v1153_v30, %v1154_v9 }
 0x306   : > { %v1161_v52 = vmin.f32 %v1159_v14, %v1160_v17 }
 0x308   : > { %v1162_v19 = vrot.slane %v1161_v52, 4 }
 0x30a   : > { %v1163_v39 = vmin.f32 %v1161_v52, %v1162_v19 }
 0x30c   : > { %v1164_v40 = vrot.slane %v1163_v39, 2 }
 0x30e   : > { %v1165_v31 = vmin.f32 %v1163_v39, %v1164_v40 }
 0x310   : > { %v1166_v32 = vrot.slane %v1165_v31, 1 }
 0x312   : > { %v1167_v60 = vmin.f32 %v1165_v31, %v1166_v32 }
 0x314   : > { %2455 = vpush %v1167_v60 }
 0x31d   : > { %v1573_v61 = vpop.xlane.xlu1 %1572 }
 0x31e   : > { %v1574_v58 = vrot.slane %v1573_v61, 4 }
 0x320   : > { %v1575_v53 = vadd.f32 %v1574_v58, %v1573_v61 }
 0x321   : > { %v1893_v10 = vpop.xlane.xlu1 %1892 }
 0x322   : > { %v1576_v4 = vrot.slane %v1575_v53, 2  ;;  %v1894_v59 = vrot.slane %v1893_v10, 4 }
 0x324   : > { %v1895_v51 = vadd.f32 %v1894_v59, %v1893_v10  ;;  %v1577_v26 = vadd.f32 %v1576_v4, %v1575_v53 }
 0x326   : > { %v1896_v47 = vrot.slane %v1895_v51, 2  ;;  %v1578_v41 = vrot.slane %v1577_v26, 1 }
 0x328   : > { %v1897_v20 = vadd.f32 %v1896_v47, %v1895_v51  ;;  %v1579_v6 = vadd.f32 %v1578_v41, %v1577_v26 }
 0x32a   : > { %2457 = vpush %v1579_v6  ;;  %v1898_v22 = vrot.slane %v1897_v20, 1 }
 0x32b   : > { %2459 = vpush %v1610_v1 }
 0x32c   : > { %v1899_v50 = vadd.f32 %v1898_v22, %v1897_v20 }
 0x32e   : > { %2461 = vpush %v1899_v50 }
 0x32f   : > { %2463 = vpush %v1939_v8 }
 0x335   : > { %s2454_s12 = spop %2453 }
 0x345   : > { %s2456_s13 = spop %2455 }
 0x346   : > { %s3904_s13 = smov (!%p1171_p4, %s2456_s13), %s2454_s12  ;;  %s1966_s12 = scalar_lea.sflag [#allocation5], %s370_s25 }
 0x347   : > { %s1173_s18 = smul.f32 0.015625, %s3904_s13  ;;  %s2602_s13 = scalar_lea.vmem %s3786_s28, 16 }
 0x348   : > { %p2603_p5 = scmp.ne.s32.totalorder %s3786_s28, %s2602_s13 }
 0x349   : > { %v1942_v54 = vstv %s1173_s18  ;;  %s2606_s18 = sshll.u32 %s2670_s17, 4  ;;  %s2607_s18 = int_to_ptr.vmem [resolvable:$false] %s2606_s18 }
 0x34a   : > { %v1943_v2 = vsel %vm1622_vm3, %v1942_v54, 0.0  ;;  %vm1959_vm3 = vcmp.eq.s32.totalorder %v3897_v63, 5  ;;  %p2604_p6 = pnand %p2603_p5, %p2762_p10  ;;  %p2609_p8 = scmp.lt.s32.totalorder %s3786_s28, %s2607_s18 }
 0x34b   : > { %v1947_v5 = vadd.f32 %v1946_v18, %v1943_v2 }
 0x34c   : > { %p2605_p7 = pneg %p2604_p6 }
 0x35b   : > { %s2458_s20 = spop %2457 }
 0x35c   : > { %v1948_v29 = vstv %s2458_s20  ;;  %s2460_s21 = spop %2459  ;;  %s2608_s20 = scalar_lea.vmem %s2607_s18, 32 }
 0x35d   : > { %v1949_v43 = vsel %vm1623_vm2, %v1948_v29, 0.0  ;;  %v1952_v46 = vstv %s2460_s21  ;;  %vm1963_vm2 = vcmask 57344   ;;  %p2610_p9 = scmp.lt.s32.totalorder %s2608_s20, %s2602_s13 }
 0x35e   : > { %v1950_v38 = vadd.f32 %v1949_v43, %v1947_v5  ;;  %v1953_v13 = vsel %vm1951_vm13, %v1952_v46, 0.0 }
 0x35f   : > { %s2462_s26 = spop %2461  ;;  %p2611_p12 = por %p2610_p9, %p2609_p8 }
 0x360   : > { %v1954_v16 = vadd.f32 %v1953_v13, %v1950_v38  ;;  %s2464_s27 = spop %2463 }
 0x361   : > { %s1941_s0 = sadd.f32 %s2464_s27, %s2462_s26  ;;  %p2612_p13 = pnand %p2611_p12, %p2605_p7 }
 0x362   : > { %v1958_v0 = vadd.f32 %v1957_v34, %v1954_v16 }
 0x363   : > { %v1960_v36 = vstv %s1941_s0 }
 0x364   : > { %v1961_v21 = vsel %vm1959_vm3, %v1960_v36, 0.0 }
 0x365   : > { %v1962_v55 = vadd.f32 %v1961_v21, %v1958_v0 }
 0x367   : > { %1964 = vst.msk [vmem:[%s371_s22] sm:$0x1] %vm1963_vm2, %v1962_v55 }
 0x368   : > { %2615 = shalt.err (!%p2612_p13)
}
 0x369   : > { %s2616_s21 = scalar_lea.hbm %s3784_s10, 16  ;;  %s2620_s27 = scalar_lea.hbm %s3835_s9, 32 }
 0x36a   : > { %p2617_p0 = scmp.ne.s32.totalorder %s3784_s10, %s2616_s21  ;;  %p2621_p3 = scmp.lt.u32.totalorder %s3784_s10, %s3835_s9 }
 0x36b   : > { %p2622_p4 = scmp.lt.u32.totalorder %s2620_s27, %s2616_s21  ;;  %p2624_p6 = scmp.lt.u32.totalorder %s2616_s21, %s3784_s10 }
 0x36c   : > { %p2618_p1 = pnand %p2617_p0, %p2762_p10 }
 0x36d   : > { %p2623_p5 = por %p2622_p4, %p2621_p3 }
 0x36e   : > { %p2619_p2 = pneg %p2618_p1 }
 0x36f   : > { %p2625_p7 = por %p2624_p6, %p2623_p5 }
 0x371   : > { %p2626_p8 = pnand %p2625_p7, %p2619_p2 }
 0x373   : > { %2629 = shalt.err (!%p2626_p8)
}
 0x374   : > { %2465 = dma.vmem_to_hbm [thread:$0]  (%p2762_p10), %s3786_s28, 16, %s3784_s10, %s1966_s12  }
 0x375 PF: > { %p2471_p9 = scmp.ge.s32.totalorder %s2666_s16, 2  ;;  %s1990_s22 = sand.u32 1, %s2654_s14  }
 0x376   : > { %s1991_s29 = scalar_lea.sflag [#allocation5], %s1990_s22 }
 0x377   : > { %p2468_p12 = pnand %p2471_p9, %p2766_p11 }
 0x379   : > { %2649 = dma.done.wait (!%p2468_p12), %s1991_s29, 16  }
 0x37a   : > { %2651 = vsyncadd (!%p2468_p12), %s1991_s29, 4294967280  ;;  %s3898_s11 = sld [smem:[#allocation8_spill]]  ;;  %s3899_s0 = sld [smem:[#allocation9_spill]] }
 0x37b   : > { %p25_p13 = scmp.ge.s32.totalorder %s2749_s19, 4   ;;  %s3900_s14 = smov %s2658_s15 }
 0x37c   : > { %s3902_s16 = smov %s2749_s19 }
 0x37d   :  { %27 = sbr.rel (!%p25_p13) target bundleno = 18 (0x12), region = 102 }
 0x380   : > { %s3901_s15 = smov %s3898_s11 }
 0x384   :  { %1995 = vsyncpa [#allocation5], 1 }
 0x385   :  { %1997 = vsyncpa [#allocation5 + $0x1], 1 }

</bundles_post_ra>
